<compile_context>
chip_gen: v7x
topology: tpu7x:2x2x1
jax: 0.10.0
libtpu: 0.0.40
codegen_flags: <defaults>
</compile_context>

<pallas_src>
import math

import jax
import jax.numpy as jnp
from jax.experimental import pallas as pl
from jax.experimental.pallas import tpu as pltpu

# TODO(synk): SNNParameters defaults are not shown in the source; tau_syn is a
# deterministic constant here (the provided lsnn_step uses the same sp.tau_syn
# for both the synaptic and membrane decays, so we do too).
TAU_SYN = 0.5
V_TH = 1.0      # LSNNParameters.v_th (b is carried unchanged by lsnn_step)
V_LEAK = 0.0    # LSNNParameters.v_leak -> initial membrane potential


def _round_up(x, m):
    return (x + m - 1) // m * m


def _cdiv(a, b):
    return -(-a // b)


def _make_kernel(tt, t_actual, tau_syn, v_th, v_leak, mask_tail):
    """Build the per-(batch-block, time-block) kernel body."""

    def kernel(pre_ref, wrec_ref, bias_ref, out_ref, zfin_ref, vfin_ref, ifin_ref):
        t_blk = pl.program_id(1)     # grid = (batch_blocks, time_blocks)

        # The final-state outputs have a constant block index along the time
        # axis, so they stay resident in VMEM across time blocks and double as
        # the carried (z, v, i) state.  Initialize at the first time block of
        # each batch block.
        @pl.when(t_blk == 0)
        def _():
            zfin_ref[...] = jnp.zeros(zfin_ref.shape, zfin_ref.dtype)
            vfin_ref[...] = jnp.full(vfin_ref.shape, v_leak, vfin_ref.dtype)
            ifin_ref[...] = jnp.zeros(ifin_ref.shape, ifin_ref.dtype)

        # Hoist resident reads / broadcasts out of the inner time loop.
        wrec = wrec_ref[...]                                       # (Hp, Hp) bf16
        bias = jnp.broadcast_to(bias_ref[...], zfin_ref.shape)     # (Bt, Hp) f32
        t0 = t_blk * tt

        def step(k, carry):
            z, v, i = carry
            rec = jnp.dot(z.astype(jnp.bfloat16), wrec,
                          preferred_element_type=jnp.float32)
            i_new = tau_syn * i + pre_ref[k].astype(jnp.float32) + rec
            v_new = tau_syn * v * (1.0 - z) + i_new + bias
            z_new = (v_new - v_th > 0.0).astype(jnp.float32)
            out_ref[k] = z_new.astype(out_ref.dtype)      # bf16 spike store
            if mask_tail:
                valid = (t0 + k) < t_actual               # padded-tail guard
                z_new = jnp.where(valid, z_new, z)
                v_new = jnp.where(valid, v_new, v)
                i_new = jnp.where(valid, i_new, i)
            return z_new, v_new, i_new

        # Full unroll for short time blocks, partial unroll (8) for long ones
        # to keep LLO visibility without blowing up vreg live ranges.
        unroll = True if tt <= 8 else 8
        z, v, i = jax.lax.fori_loop(
            0, tt, step, (zfin_ref[...], vfin_ref[...], ifin_ref[...]),
            unroll=unroll)

        zfin_ref[...] = z
        vfin_ref[...] = v
        ifin_ref[...] = i

    return kernel


def lsnn_recurrent_forward(x, w_in, w_rec, bias, *,
                           tau_syn=TAU_SYN, v_th=V_TH, v_leak=V_LEAK,
                           time_block=16, batch_block=None):
    """x: (T,B,D) f32; w_in: (H,D); w_rec: (H,H); bias: (H,)."""
    x = jnp.asarray(x, jnp.float32)
    w_in = jnp.asarray(w_in, jnp.float32)
    w_rec = jnp.asarray(w_rec, jnp.float32)
    bias = jnp.asarray(bias, jnp.float32)
    T, B, D = x.shape
    H = w_in.shape[0]

    # ---- tile geometry: B -> mult of 8 (sublane), H -> mult of 128 (lane),
    #      T -> mult of the time block (tail masked in-kernel). ----
    Hp = _round_up(H, 128)
    B8 = _round_up(B, 8)
    if batch_block is not None:
        Bt = _round_up(min(batch_block, B), 8)
    elif B8 >= 512:
        # Large batch: two batch blocks so v7x's second TensorCore has work,
        # while keeping >=256 rows per block for MXU fill on v6e/v7x.
        Bt = _round_up(_cdiv(B8, 2), 8)
    else:
        Bt = B8
    Bp = _round_up(B8, Bt)
    nb = Bp // Bt

    tt = min(max(int(time_block), 1), T)
    nt = _cdiv(T, tt)
    Tp = nt * tt
    mask_tail = Tp != T

    # ---- hoisted input projection: pad x / W_in FIRST, emit the padded bf16
    #      drive straight out of one big MXU matmul (no extra pad pass). ----
    x_p = x
    if Tp != T or Bp != B:
        x_p = jnp.pad(x, ((0, Tp - T), (0, Bp - B), (0, 0)))
    w_in_t = w_in.T                                            # (D, H)
    if Hp != H:
        w_in_t = jnp.pad(w_in_t, ((0, 0), (0, Hp - H)))
    pre = jnp.einsum(
        "tbd,dh->tbh",
        x_p.astype(jnp.bfloat16),
        w_in_t.astype(jnp.bfloat16),
        preferred_element_type=jnp.float32,
    ).astype(jnp.bfloat16)                                     # (Tp, Bp, Hp) bf16

    wrec_t = w_rec.T                                           # RHS of z @ W_rec^T
    bias_p = bias
    if Hp != H:
        wrec_t = jnp.pad(wrec_t, ((0, Hp - H), (0, Hp - H)))
        bias_p = jnp.pad(bias, (0, Hp - H))
    wrec_bf16 = wrec_t.astype(jnp.bfloat16)                    # resident bf16 weights
    bias2d = bias_p.reshape(1, Hp).astype(jnp.float32)

    # ---- explicit VMEM budget: 2x pre block + 2x spike block (bf16, double-
    #      buffered) + resident W_rec^T/bias + resident state outputs, plus
    #      headroom; capped below the chip's physical VMEM. ----
    blk_bytes = tt * Bt * Hp * 2
    est = (2 * blk_bytes                 # pre (bf16)
           + 2 * blk_bytes               # spikes (bf16)
           + Hp * Hp * 2 + Hp * 4        # W_rec^T (single-buffered) + bias
           + 3 * 2 * Bt * Hp * 4)        # resident final-state outputs
    try:
        phys_vmem = pltpu.get_tpu_info().vmem_capacity_bytes
    except Exception:
        phys_vmem = 64 << 20             # conservative (v7x per-TC VMEM)
    cap = min(phys_vmem - (12 << 20), 100 << 20)
    vmem_limit = int(min(max(est + (4 << 20), 32 << 20), cap))

    kernel = _make_kernel(tt, T, float(tau_syn), float(v_th), float(v_leak),
                          mask_tail)

    out_p, zfin_p, vfin_p, ifin_p = pl.pallas_call(
        kernel,
        out_shape=(
            jax.ShapeDtypeStruct((Tp, Bp, Hp), jnp.bfloat16),   # spikes (0/1)
            jax.ShapeDtypeStruct((Bp, Hp), jnp.float32),        # final z
            jax.ShapeDtypeStruct((Bp, Hp), jnp.float32),        # final v
            jax.ShapeDtypeStruct((Bp, Hp), jnp.float32),        # final i
        ),
        grid_spec=pltpu.PrefetchScalarGridSpec(
            num_scalar_prefetch=0,
            grid=(nb, nt),
            in_specs=[
                pl.BlockSpec((tt, Bt, Hp), lambda b, t: (t, b, 0)),   # pre drive
                pl.BlockSpec((Hp, Hp), lambda b, t: (0, 0),
                             pipeline_mode=pl.Buffered(1)),           # W_rec^T (resident)
                pl.BlockSpec((1, Hp), lambda b, t: (0, 0),
                             pipeline_mode=pl.Buffered(1)),           # bias (resident)
            ],
            out_specs=[
                pl.BlockSpec((tt, Bt, Hp), lambda b, t: (t, b, 0)),   # spikes
                pl.BlockSpec((Bt, Hp), lambda b, t: (b, 0)),          # final z (state)
                pl.BlockSpec((Bt, Hp), lambda b, t: (b, 0)),          # final v (state)
                pl.BlockSpec((Bt, Hp), lambda b, t: (b, 0)),          # final i (state)
            ],
        ),
        compiler_params=pltpu.CompilerParams(
            dimension_semantics=("parallel", "arbitrary"),
            vmem_limit_bytes=vmem_limit),
    )(pre, wrec_bf16, bias2d)

    out = out_p[:T, :B, :H].astype(jnp.float32)
    z_fin = zfin_p[:B, :H]
    v_fin = vfin_p[:B, :H]
    i_fin = ifin_p[:B, :H]
    b_fin = jnp.full((B, H), v_th, dtype=jnp.float32)   # b constant in lsnn_step
    return out, (z_fin, v_fin, i_fin, b_fin)


def _reference(x, w_in, w_rec, bias, *, tau_syn=TAU_SYN, v_th=V_TH, v_leak=V_LEAK):
    """Pure-JAX mirror of the PyTorch forward loop (same bf16 pre/matmul policy)."""
    T, B, D = x.shape
    H = w_in.shape[0]
    pre = jnp.einsum(
        "tbd,dh->tbh",
        x.astype(jnp.bfloat16),
        w_in.T.astype(jnp.bfloat16),
        preferred_element_type=jnp.float32,
    ).astype(jnp.bfloat16)
    wrec_bf16 = w_rec.T.astype(jnp.bfloat16)

    def step(state, pre_t):
        z, v, i = state
        rec = jnp.dot(z.astype(jnp.bfloat16), wrec_bf16,
                      preferred_element_type=jnp.float32)
        i_new = tau_syn * i + pre_t.astype(jnp.float32) + rec
        v_new = tau_syn * v * (1.0 - z) + i_new + bias
        z_new = (v_new - v_th > 0.0).astype(jnp.float32)
        return (z_new, v_new, i_new), z_new

    init = (jnp.zeros((B, H), jnp.float32),
            jnp.full((B, H), v_leak, jnp.float32),
            jnp.zeros((B, H), jnp.float32))
    (zf, vf, i_f), outs = jax.lax.scan(step, init, pre)
    return outs, (zf, vf, i_f)


def _run_case(seed, T, B, D, H, time_block):
    key = jax.random.PRNGKey(seed)
    k_in, k_rec, k_b, k_x = jax.random.split(key, 4)

    # Deterministic Kaiming-uniform-style init (reset_parameters with a=sqrt(5)
    # gives bound = 1/sqrt(fan_in)).
    w_in = jax.random.uniform(k_in, (H, D), jnp.float32,
                              minval=-1.0 / math.sqrt(D), maxval=1.0 / math.sqrt(D))
    w_rec = jax.random.uniform(k_rec, (H, H), jnp.float32,
                               minval=-1.0 / math.sqrt(H), maxval=1.0 / math.sqrt(H))
    # autapses=False -> zero the recurrent diagonal
    w_rec = w_rec * (1.0 - jnp.eye(H, dtype=jnp.float32))
    bias = jax.random.uniform(k_b, (H,), jnp.float32,
                              minval=-1.0 / math.sqrt(D), maxval=1.0 / math.sqrt(D))

    # Binary spike-like inputs, scaled so the network actually fires.
    x = (jax.random.uniform(k_x, (T, B, D)) > 0.5).astype(jnp.float32) * 2.0

    out, (z_f, v_f, i_f, b_f) = lsnn_recurrent_forward(
        x, w_in, w_rec, bias, time_block=time_block)
    jax.block_until_ready((out, z_f, v_f, i_f, b_f))

    ref_out, (ref_z, ref_v, ref_i) = _reference(x, w_in, w_rec, bias)

    assert out.shape == (T, B, H)
    assert jnp.allclose(out, ref_out, atol=1e-5), "spike train mismatch"
    assert jnp.allclose(v_f, ref_v, atol=1e-3), "final v mismatch"
    assert jnp.allclose(i_f, ref_i, atol=1e-3), "final i mismatch"
    assert jnp.allclose(z_f, ref_z, atol=1e-5), "final z mismatch"
    assert jnp.allclose(b_f, jnp.full((B, H), V_TH)), "final b mismatch"


if __name__ == "__main__":
    # Aligned case: exercises multiple time blocks with the output-resident
    # state carry (T=16, tt=8 -> 2 time blocks, no padding anywhere).
    _run_case(seed=0, T=16, B=8, D=16, H=128, time_block=8)
    # Ragged case: exercises B/H padding and the masked time tail
    # (T=13 -> Tp=16, B=6 -> 8, H=96 -> 128).
    _run_case(seed=1, T=13, B=6, D=16, H=96, time_block=8)
    print("KERNEL_OK")
</pallas_src>

<mosaic_0001>
module attributes {stable_mosaic.version = 11 : i64} {
  func.func @kernel(%arg0: i32, %arg1: i32, %arg2: memref<8x8x128xbf16, #tpu.memory_space<vmem>>, %arg3: memref<128x128xbf16, #tpu.memory_space<vmem>>, %arg4: memref<1x128xf32, #tpu.memory_space<vmem>>, %arg5: memref<8x8x128xbf16, #tpu.memory_space<vmem>>, %arg6: memref<8x128xf32, #tpu.memory_space<vmem>>, %arg7: memref<8x128xf32, #tpu.memory_space<vmem>>, %arg8: memref<8x128xf32, #tpu.memory_space<vmem>>) attributes {dimension_semantics = [#tpu.dimension_semantics<parallel>, #tpu.dimension_semantics<arbitrary>], iteration_bounds = array<i64: 1, 2>, scalar_prefetch = 0 : i64, scratch_operands = 0 : i64, tpu.core_type = #tpu.core_type<tc>, window_params = [{transform_indices = @transform_0, window_bounds = array<i64: 8, 8, 128>}, {pipeline_mode = #tpu.pipeline_mode<synchronous>, transform_indices = @transform_1, window_bounds = array<i64: 128, 128>}, {pipeline_mode = #tpu.pipeline_mode<synchronous>, transform_indices = @transform_2, window_bounds = array<i64: 1, 128>}, {transform_indices = @transform_3, window_bounds = array<i64: 8, 8, 128>}, {transform_indices = @transform_4, window_bounds = array<i64: 8, 128>}, {transform_indices = @transform_5, window_bounds = array<i64: 8, 128>}, {transform_indices = @transform_6, window_bounds = array<i64: 8, 128>}]} {
    %c0_i32 = arith.constant 0 : i32
    %0 = arith.cmpi eq, %arg1, %c0_i32 : i32
    %1 = arith.extui %0 : i1 to i32
    %c0_i32_0 = arith.constant 0 : i32
    %2 = arith.cmpi ne, %1, %c0_i32_0 : i32
    scf.if %2 {
      %cst_96 = arith.constant 0.000000e+00 : f32
      %237 = vector.broadcast %cst_96 : f32 to vector<8x128xf32>
      %c0_97 = arith.constant 0 : index
      %c0_98 = arith.constant 0 : index
      %238 = vector.load %arg6[%c0_97, %c0_98] : memref<8x128xf32, #tpu.memory_space<vmem>>, vector<8x128xf32>
      tpu.vector_store %arg6[%c0_97, %c0_98], %237 {strides = array<i32>} : memref<8x128xf32, #tpu.memory_space<vmem>>, vector<8x128xf32>,
      %cst_99 = arith.constant 0.000000e+00 : f32
      %239 = vector.broadcast %cst_99 : f32 to vector<8x128xf32>
      %c0_100 = arith.constant 0 : index
      %c0_101 = arith.constant 0 : index
      %240 = vector.load %arg7[%c0_100, %c0_101] : memref<8x128xf32, #tpu.memory_space<vmem>>, vector<8x128xf32>
      tpu.vector_store %arg7[%c0_100, %c0_101], %239 {strides = array<i32>} : memref<8x128xf32, #tpu.memory_space<vmem>>, vector<8x128xf32>,
      %cst_102 = arith.constant 0.000000e+00 : f32
      %241 = vector.broadcast %cst_102 : f32 to vector<8x128xf32>
      %c0_103 = arith.constant 0 : index
      %c0_104 = arith.constant 0 : index
      %242 = vector.load %arg8[%c0_103, %c0_104] : memref<8x128xf32, #tpu.memory_space<vmem>>, vector<8x128xf32>
      tpu.vector_store %arg8[%c0_103, %c0_104], %241 {strides = array<i32>} : memref<8x128xf32, #tpu.memory_space<vmem>>, vector<8x128xf32>,
    } else {
    }
    %c0 = arith.constant 0 : index
    %c0_1 = arith.constant 0 : index
    %3 = vector.load %arg3[%c0, %c0_1] : memref<128x128xbf16, #tpu.memory_space<vmem>>, vector<128x128xbf16>
    %c0_2 = arith.constant 0 : index
    %c0_3 = arith.constant 0 : index
    %4 = vector.load %arg4[%c0_2, %c0_3] : memref<1x128xf32, #tpu.memory_space<vmem>>, vector<1x128xf32>
    %5 = vector.shape_cast %4 : vector<1x128xf32> to vector<1x128xf32>
    %6 = vector.broadcast %5 : vector<1x128xf32> to vector<8x128xf32>
    %c0_4 = arith.constant 0 : index
    %c0_5 = arith.constant 0 : index
    %7 = vector.load %arg6[%c0_4, %c0_5] : memref<8x128xf32, #tpu.memory_space<vmem>>, vector<8x128xf32>
    %c0_6 = arith.constant 0 : index
    %c0_7 = arith.constant 0 : index
    %8 = vector.load %arg7[%c0_6, %c0_7] : memref<8x128xf32, #tpu.memory_space<vmem>>, vector<8x128xf32>
    %c0_8 = arith.constant 0 : index
    %c0_9 = arith.constant 0 : index
    %9 = vector.load %arg8[%c0_8, %c0_9] : memref<8x128xf32, #tpu.memory_space<vmem>>, vector<8x128xf32>
    %c0_i32_10 = arith.constant 0 : i32
    %10 = arith.truncf %7 : vector<8x128xf32> to vector<8x128xbf16>
    %cst = arith.constant dense<0.000000e+00> : vector<8x128xf32>
    %11 = tpu.matmul %10, %3, %cst {dimension_numbers = #tpu.dot_dimension_numbers<[1], [0], [0], [1], [0, 0, 1, 1], [], []>} : vector<8x128xbf16>, vector<128x128xbf16>, vector<8x128xf32> -> vector<8x128xf32>
    %cst_11 = arith.constant 5.000000e-01 : f32
    %12 = vector.broadcast %cst_11 : f32 to vector<8x128xf32>
    %13 = arith.mulf %12, %9 : vector<8x128xf32>
    %14 = arith.index_cast %c0_i32_10 : i32 to index
    %c0_12 = arith.constant 0 : index
    %c0_13 = arith.constant 0 : index
    %15 = vector.load %arg2[%14, %c0_12, %c0_13] : memref<8x8x128xbf16, #tpu.memory_space<vmem>>, vector<1x8x128xbf16>
    %16 = vector.shape_cast %15 : vector<1x8x128xbf16> to vector<8x128xbf16>
    %17 = arith.extf %16 : vector<8x128xbf16> to vector<8x128xf32>
    %18 = arith.addf %13, %17 : vector<8x128xf32>
    %19 = arith.addf %18, %11 : vector<8x128xf32>
    %cst_14 = arith.constant 5.000000e-01 : f32
    %20 = vector.broadcast %cst_14 : f32 to vector<8x128xf32>
    %21 = arith.mulf %20, %8 : vector<8x128xf32>
    %cst_15 = arith.constant 1.000000e+00 : f32
    %22 = vector.broadcast %cst_15 : f32 to vector<8x128xf32>
    %23 = arith.subf %22, %7 : vector<8x128xf32>
    %24 = arith.mulf %21, %23 : vector<8x128xf32>
    %25 = arith.addf %24, %19 : vector<8x128xf32>
    %26 = arith.addf %25, %6 : vector<8x128xf32>
    %cst_16 = arith.constant 1.000000e+00 : f32
    %27 = vector.broadcast %cst_16 : f32 to vector<8x128xf32>
    %28 = arith.subf %26, %27 : vector<8x128xf32>
    %cst_17 = arith.constant 0.000000e+00 : f32
    %29 = vector.broadcast %cst_17 : f32 to vector<8x128xf32>
    %30 = arith.cmpf ogt, %28, %29 : vector<8x128xf32>
    %31 = arith.extui %30 : vector<8x128xi1> to vector<8x128xi32>
    %32 = arith.sitofp %31 : vector<8x128xi32> to vector<8x128xf32>
    %33 = arith.truncf %32 : vector<8x128xf32> to vector<8x128xbf16>
    %34 = arith.index_cast %c0_i32_10 : i32 to index
    %c0_18 = arith.constant 0 : index
    %c0_19 = arith.constant 0 : index
    %35 = vector.load %arg5[%34, %c0_18, %c0_19] : memref<8x8x128xbf16, #tpu.memory_space<vmem>>, vector<1x8x128xbf16>
    %36 = vector.shape_cast %35 : vector<1x8x128xbf16> to vector<8x128xbf16>
    %37 = vector.shape_cast %33 : vector<8x128xbf16> to vector<1x8x128xbf16>
    tpu.vector_store %arg5[%34, %c0_18, %c0_19], %37 {strides = array<i32>} : memref<8x8x128xbf16, #tpu.memory_space<vmem>>, vector<1x8x128xbf16>,
    %c1_i32 = arith.constant 1 : i32
    %38 = arith.truncf %32 : vector<8x128xf32> to vector<8x128xbf16>
    %cst_20 = arith.constant dense<0.000000e+00> : vector<8x128xf32>
    %39 = tpu.matmul %38, %3, %cst_20 {dimension_numbers = #tpu.dot_dimension_numbers<[1], [0], [0], [1], [0, 0, 1, 1], [], []>} : vector<8x128xbf16>, vector<128x128xbf16>, vector<8x128xf32> -> vector<8x128xf32>
    %cst_21 = arith.constant 5.000000e-01 : f32
    %40 = vector.broadcast %cst_21 : f32 to vector<8x128xf32>
    %41 = arith.mulf %40, %19 : vector<8x128xf32>
    %42 = arith.index_cast %c1_i32 : i32 to index
    %c0_22 = arith.constant 0 : index
    %c0_23 = arith.constant 0 : index
    %43 = vector.load %arg2[%42, %c0_22, %c0_23] : memref<8x8x128xbf16, #tpu.memory_space<vmem>>, vector<1x8x128xbf16>
    %44 = vector.shape_cast %43 : vector<1x8x128xbf16> to vector<8x128xbf16>
    %45 = arith.extf %44 : vector<8x128xbf16> to vector<8x128xf32>
    %46 = arith.addf %41, %45 : vector<8x128xf32>
    %47 = arith.addf %46, %39 : vector<8x128xf32>
    %cst_24 = arith.constant 5.000000e-01 : f32
    %48 = vector.broadcast %cst_24 : f32 to vector<8x128xf32>
    %49 = arith.mulf %48, %26 : vector<8x128xf32>
    %cst_25 = arith.constant 1.000000e+00 : f32
    %50 = vector.broadcast %cst_25 : f32 to vector<8x128xf32>
    %51 = arith.subf %50, %32 : vector<8x128xf32>
    %52 = arith.mulf %49, %51 : vector<8x128xf32>
    %53 = arith.addf %52, %47 : vector<8x128xf32>
    %54 = arith.addf %53, %6 : vector<8x128xf32>
    %cst_26 = arith.constant 1.000000e+00 : f32
    %55 = vector.broadcast %cst_26 : f32 to vector<8x128xf32>
    %56 = arith.subf %54, %55 : vector<8x128xf32>
    %cst_27 = arith.constant 0.000000e+00 : f32
    %57 = vector.broadcast %cst_27 : f32 to vector<8x128xf32>
    %58 = arith.cmpf ogt, %56, %57 : vector<8x128xf32>
    %59 = arith.extui %58 : vector<8x128xi1> to vector<8x128xi32>
    %60 = arith.sitofp %59 : vector<8x128xi32> to vector<8x128xf32>
    %61 = arith.truncf %60 : vector<8x128xf32> to vector<8x128xbf16>
    %62 = arith.index_cast %c1_i32 : i32 to index
    %c0_28 = arith.constant 0 : index
    %c0_29 = arith.constant 0 : index
    %63 = vector.load %arg5[%62, %c0_28, %c0_29] : memref<8x8x128xbf16, #tpu.memory_space<vmem>>, vector<1x8x128xbf16>
    %64 = vector.shape_cast %63 : vector<1x8x128xbf16> to vector<8x128xbf16>
    %65 = vector.shape_cast %61 : vector<8x128xbf16> to vector<1x8x128xbf16>
    tpu.vector_store %arg5[%62, %c0_28, %c0_29], %65 {strides = array<i32>} : memref<8x8x128xbf16, #tpu.memory_space<vmem>>, vector<1x8x128xbf16>,
    %c2_i32 = arith.constant 2 : i32
    %66 = arith.truncf %60 : vector<8x128xf32> to vector<8x128xbf16>
    %cst_30 = arith.constant dense<0.000000e+00> : vector<8x128xf32>
    %67 = tpu.matmul %66, %3, %cst_30 {dimension_numbers = #tpu.dot_dimension_numbers<[1], [0], [0], [1], [0, 0, 1, 1], [], []>} : vector<8x128xbf16>, vector<128x128xbf16>, vector<8x128xf32> -> vector<8x128xf32>
    %cst_31 = arith.constant 5.000000e-01 : f32
    %68 = vector.broadcast %cst_31 : f32 to vector<8x128xf32>
    %69 = arith.mulf %68, %47 : vector<8x128xf32>
    %70 = arith.index_cast %c2_i32 : i32 to index
    %c0_32 = arith.constant 0 : index
    %c0_33 = arith.constant 0 : index
    %71 = vector.load %arg2[%70, %c0_32, %c0_33] : memref<8x8x128xbf16, #tpu.memory_space<vmem>>, vector<1x8x128xbf16>
    %72 = vector.shape_cast %71 : vector<1x8x128xbf16> to vector<8x128xbf16>
    %73 = arith.extf %72 : vector<8x128xbf16> to vector<8x128xf32>
    %74 = arith.addf %69, %73 : vector<8x128xf32>
    %75 = arith.addf %74, %67 : vector<8x128xf32>
    %cst_34 = arith.constant 5.000000e-01 : f32
    %76 = vector.broadcast %cst_34 : f32 to vector<8x128xf32>
    %77 = arith.mulf %76, %54 : vector<8x128xf32>
    %cst_35 = arith.constant 1.000000e+00 : f32
    %78 = vector.broadcast %cst_35 : f32 to vector<8x128xf32>
    %79 = arith.subf %78, %60 : vector<8x128xf32>
    %80 = arith.mulf %77, %79 : vector<8x128xf32>
    %81 = arith.addf %80, %75 : vector<8x128xf32>
    %82 = arith.addf %81, %6 : vector<8x128xf32>
    %cst_36 = arith.constant 1.000000e+00 : f32
    %83 = vector.broadcast %cst_36 : f32 to vector<8x128xf32>
    %84 = arith.subf %82, %83 : vector<8x128xf32>
    %cst_37 = arith.constant 0.000000e+00 : f32
    %85 = vector.broadcast %cst_37 : f32 to vector<8x128xf32>
    %86 = arith.cmpf ogt, %84, %85 : vector<8x128xf32>
    %87 = arith.extui %86 : vector<8x128xi1> to vector<8x128xi32>
    %88 = arith.sitofp %87 : vector<8x128xi32> to vector<8x128xf32>
    %89 = arith.truncf %88 : vector<8x128xf32> to vector<8x128xbf16>
    %90 = arith.index_cast %c2_i32 : i32 to index
    %c0_38 = arith.constant 0 : index
    %c0_39 = arith.constant 0 : index
    %91 = vector.load %arg5[%90, %c0_38, %c0_39] : memref<8x8x128xbf16, #tpu.memory_space<vmem>>, vector<1x8x128xbf16>
    %92 = vector.shape_cast %91 : vector<1x8x128xbf16> to vector<8x128xbf16>
    %93 = vector.shape_cast %89 : vector<8x128xbf16> to vector<1x8x128xbf16>
    tpu.vector_store %arg5[%90, %c0_38, %c0_39], %93 {strides = array<i32>} : memref<8x8x128xbf16, #tpu.memory_space<vmem>>, vector<1x8x128xbf16>,
    %c3_i32 = arith.constant 3 : i32
    %94 = arith.truncf %88 : vector<8x128xf32> to vector<8x128xbf16>
    %cst_40 = arith.constant dense<0.000000e+00> : vector<8x128xf32>
    %95 = tpu.matmul %94, %3, %cst_40 {dimension_numbers = #tpu.dot_dimension_numbers<[1], [0], [0], [1], [0, 0, 1, 1], [], []>} : vector<8x128xbf16>, vector<128x128xbf16>, vector<8x128xf32> -> vector<8x128xf32>
    %cst_41 = arith.constant 5.000000e-01 : f32
    %96 = vector.broadcast %cst_41 : f32 to vector<8x128xf32>
    %97 = arith.mulf %96, %75 : vector<8x128xf32>
    %98 = arith.index_cast %c3_i32 : i32 to index
    %c0_42 = arith.constant 0 : index
    %c0_43 = arith.constant 0 : index
    %99 = vector.load %arg2[%98, %c0_42, %c0_43] : memref<8x8x128xbf16, #tpu.memory_space<vmem>>, vector<1x8x128xbf16>
    %100 = vector.shape_cast %99 : vector<1x8x128xbf16> to vector<8x128xbf16>
    %101 = arith.extf %100 : vector<8x128xbf16> to vector<8x128xf32>
    %102 = arith.addf %97, %101 : vector<8x128xf32>
    %103 = arith.addf %102, %95 : vector<8x128xf32>
    %cst_44 = arith.constant 5.000000e-01 : f32
    %104 = vector.broadcast %cst_44 : f32 to vector<8x128xf32>
    %105 = arith.mulf %104, %82 : vector<8x128xf32>
    %cst_45 = arith.constant 1.000000e+00 : f32
    %106 = vector.broadcast %cst_45 : f32 to vector<8x128xf32>
    %107 = arith.subf %106, %88 : vector<8x128xf32>
    %108 = arith.mulf %105, %107 : vector<8x128xf32>
    %109 = arith.addf %108, %103 : vector<8x128xf32>
    %110 = arith.addf %109, %6 : vector<8x128xf32>
    %cst_46 = arith.constant 1.000000e+00 : f32
    %111 = vector.broadcast %cst_46 : f32 to vector<8x128xf32>
    %112 = arith.subf %110, %111 : vector<8x128xf32>
    %cst_47 = arith.constant 0.000000e+00 : f32
    %113 = vector.broadcast %cst_47 : f32 to vector<8x128xf32>
    %114 = arith.cmpf ogt, %112, %113 : vector<8x128xf32>
    %115 = arith.extui %114 : vector<8x128xi1> to vector<8x128xi32>
    %116 = arith.sitofp %115 : vector<8x128xi32> to vector<8x128xf32>
    %117 = arith.truncf %116 : vector<8x128xf32> to vector<8x128xbf16>
    %118 = arith.index_cast %c3_i32 : i32 to index
    %c0_48 = arith.constant 0 : index
    %c0_49 = arith.constant 0 : index
    %119 = vector.load %arg5[%118, %c0_48, %c0_49] : memref<8x8x128xbf16, #tpu.memory_space<vmem>>, vector<1x8x128xbf16>
    %120 = vector.shape_cast %119 : vector<1x8x128xbf16> to vector<8x128xbf16>
    %121 = vector.shape_cast %117 : vector<8x128xbf16> to vector<1x8x128xbf16>
    tpu.vector_store %arg5[%118, %c0_48, %c0_49], %121 {strides = array<i32>} : memref<8x8x128xbf16, #tpu.memory_space<vmem>>, vector<1x8x128xbf16>,
    %c4_i32 = arith.constant 4 : i32
    %122 = arith.truncf %116 : vector<8x128xf32> to vector<8x128xbf16>
    %cst_50 = arith.constant dense<0.000000e+00> : vector<8x128xf32>
    %123 = tpu.matmul %122, %3, %cst_50 {dimension_numbers = #tpu.dot_dimension_numbers<[1], [0], [0], [1], [0, 0, 1, 1], [], []>} : vector<8x128xbf16>, vector<128x128xbf16>, vector<8x128xf32> -> vector<8x128xf32>
    %cst_51 = arith.constant 5.000000e-01 : f32
    %124 = vector.broadcast %cst_51 : f32 to vector<8x128xf32>
    %125 = arith.mulf %124, %103 : vector<8x128xf32>
    %126 = arith.index_cast %c4_i32 : i32 to index
    %c0_52 = arith.constant 0 : index
    %c0_53 = arith.constant 0 : index
    %127 = vector.load %arg2[%126, %c0_52, %c0_53] : memref<8x8x128xbf16, #tpu.memory_space<vmem>>, vector<1x8x128xbf16>
    %128 = vector.shape_cast %127 : vector<1x8x128xbf16> to vector<8x128xbf16>
    %129 = arith.extf %128 : vector<8x128xbf16> to vector<8x128xf32>
    %130 = arith.addf %125, %129 : vector<8x128xf32>
    %131 = arith.addf %130, %123 : vector<8x128xf32>
    %cst_54 = arith.constant 5.000000e-01 : f32
    %132 = vector.broadcast %cst_54 : f32 to vector<8x128xf32>
    %133 = arith.mulf %132, %110 : vector<8x128xf32>
    %cst_55 = arith.constant 1.000000e+00 : f32
    %134 = vector.broadcast %cst_55 : f32 to vector<8x128xf32>
    %135 = arith.subf %134, %116 : vector<8x128xf32>
    %136 = arith.mulf %133, %135 : vector<8x128xf32>
    %137 = arith.addf %136, %131 : vector<8x128xf32>
    %138 = arith.addf %137, %6 : vector<8x128xf32>
    %cst_56 = arith.constant 1.000000e+00 : f32
    %139 = vector.broadcast %cst_56 : f32 to vector<8x128xf32>
    %140 = arith.subf %138, %139 : vector<8x128xf32>
    %cst_57 = arith.constant 0.000000e+00 : f32
    %141 = vector.broadcast %cst_57 : f32 to vector<8x128xf32>
    %142 = arith.cmpf ogt, %140, %141 : vector<8x128xf32>
    %143 = arith.extui %142 : vector<8x128xi1> to vector<8x128xi32>
    %144 = arith.sitofp %143 : vector<8x128xi32> to vector<8x128xf32>
    %145 = arith.truncf %144 : vector<8x128xf32> to vector<8x128xbf16>
    %146 = arith.index_cast %c4_i32 : i32 to index
    %c0_58 = arith.constant 0 : index
    %c0_59 = arith.constant 0 : index
    %147 = vector.load %arg5[%146, %c0_58, %c0_59] : memref<8x8x128xbf16, #tpu.memory_space<vmem>>, vector<1x8x128xbf16>
    %148 = vector.shape_cast %147 : vector<1x8x128xbf16> to vector<8x128xbf16>
    %149 = vector.shape_cast %145 : vector<8x128xbf16> to vector<1x8x128xbf16>
    tpu.vector_store %arg5[%146, %c0_58, %c0_59], %149 {strides = array<i32>} : memref<8x8x128xbf16, #tpu.memory_space<vmem>>, vector<1x8x128xbf16>,
    %c5_i32 = arith.constant 5 : i32
    %150 = arith.truncf %144 : vector<8x128xf32> to vector<8x128xbf16>
    %cst_60 = arith.constant dense<0.000000e+00> : vector<8x128xf32>
    %151 = tpu.matmul %150, %3, %cst_60 {dimension_numbers = #tpu.dot_dimension_numbers<[1], [0], [0], [1], [0, 0, 1, 1], [], []>} : vector<8x128xbf16>, vector<128x128xbf16>, vector<8x128xf32> -> vector<8x128xf32>
    %cst_61 = arith.constant 5.000000e-01 : f32
    %152 = vector.broadcast %cst_61 : f32 to vector<8x128xf32>
    %153 = arith.mulf %152, %131 : vector<8x128xf32>
    %154 = arith.index_cast %c5_i32 : i32 to index
    %c0_62 = arith.constant 0 : index
    %c0_63 = arith.constant 0 : index
    %155 = vector.load %arg2[%154, %c0_62, %c0_63] : memref<8x8x128xbf16, #tpu.memory_space<vmem>>, vector<1x8x128xbf16>
    %156 = vector.shape_cast %155 : vector<1x8x128xbf16> to vector<8x128xbf16>
    %157 = arith.extf %156 : vector<8x128xbf16> to vector<8x128xf32>
    %158 = arith.addf %153, %157 : vector<8x128xf32>
    %159 = arith.addf %158, %151 : vector<8x128xf32>
    %cst_64 = arith.constant 5.000000e-01 : f32
    %160 = vector.broadcast %cst_64 : f32 to vector<8x128xf32>
    %161 = arith.mulf %160, %138 : vector<8x128xf32>
    %cst_65 = arith.constant 1.000000e+00 : f32
    %162 = vector.broadcast %cst_65 : f32 to vector<8x128xf32>
    %163 = arith.subf %162, %144 : vector<8x128xf32>
    %164 = arith.mulf %161, %163 : vector<8x128xf32>
    %165 = arith.addf %164, %159 : vector<8x128xf32>
    %166 = arith.addf %165, %6 : vector<8x128xf32>
    %cst_66 = arith.constant 1.000000e+00 : f32
    %167 = vector.broadcast %cst_66 : f32 to vector<8x128xf32>
    %168 = arith.subf %166, %167 : vector<8x128xf32>
    %cst_67 = arith.constant 0.000000e+00 : f32
    %169 = vector.broadcast %cst_67 : f32 to vector<8x128xf32>
    %170 = arith.cmpf ogt, %168, %169 : vector<8x128xf32>
    %171 = arith.extui %170 : vector<8x128xi1> to vector<8x128xi32>
    %172 = arith.sitofp %171 : vector<8x128xi32> to vector<8x128xf32>
    %173 = arith.truncf %172 : vector<8x128xf32> to vector<8x128xbf16>
    %174 = arith.index_cast %c5_i32 : i32 to index
    %c0_68 = arith.constant 0 : index
    %c0_69 = arith.constant 0 : index
    %175 = vector.load %arg5[%174, %c0_68, %c0_69] : memref<8x8x128xbf16, #tpu.memory_space<vmem>>, vector<1x8x128xbf16>
    %176 = vector.shape_cast %175 : vector<1x8x128xbf16> to vector<8x128xbf16>
    %177 = vector.shape_cast %173 : vector<8x128xbf16> to vector<1x8x128xbf16>
    tpu.vector_store %arg5[%174, %c0_68, %c0_69], %177 {strides = array<i32>} : memref<8x8x128xbf16, #tpu.memory_space<vmem>>, vector<1x8x128xbf16>,
    %c6_i32 = arith.constant 6 : i32
    %178 = arith.truncf %172 : vector<8x128xf32> to vector<8x128xbf16>
    %cst_70 = arith.constant dense<0.000000e+00> : vector<8x128xf32>
    %179 = tpu.matmul %178, %3, %cst_70 {dimension_numbers = #tpu.dot_dimension_numbers<[1], [0], [0], [1], [0, 0, 1, 1], [], []>} : vector<8x128xbf16>, vector<128x128xbf16>, vector<8x128xf32> -> vector<8x128xf32>
    %cst_71 = arith.constant 5.000000e-01 : f32
    %180 = vector.broadcast %cst_71 : f32 to vector<8x128xf32>
    %181 = arith.mulf %180, %159 : vector<8x128xf32>
    %182 = arith.index_cast %c6_i32 : i32 to index
    %c0_72 = arith.constant 0 : index
    %c0_73 = arith.constant 0 : index
    %183 = vector.load %arg2[%182, %c0_72, %c0_73] : memref<8x8x128xbf16, #tpu.memory_space<vmem>>, vector<1x8x128xbf16>
    %184 = vector.shape_cast %183 : vector<1x8x128xbf16> to vector<8x128xbf16>
    %185 = arith.extf %184 : vector<8x128xbf16> to vector<8x128xf32>
    %186 = arith.addf %181, %185 : vector<8x128xf32>
    %187 = arith.addf %186, %179 : vector<8x128xf32>
    %cst_74 = arith.constant 5.000000e-01 : f32
    %188 = vector.broadcast %cst_74 : f32 to vector<8x128xf32>
    %189 = arith.mulf %188, %166 : vector<8x128xf32>
    %cst_75 = arith.constant 1.000000e+00 : f32
    %190 = vector.broadcast %cst_75 : f32 to vector<8x128xf32>
    %191 = arith.subf %190, %172 : vector<8x128xf32>
    %192 = arith.mulf %189, %191 : vector<8x128xf32>
    %193 = arith.addf %192, %187 : vector<8x128xf32>
    %194 = arith.addf %193, %6 : vector<8x128xf32>
    %cst_76 = arith.constant 1.000000e+00 : f32
    %195 = vector.broadcast %cst_76 : f32 to vector<8x128xf32>
    %196 = arith.subf %194, %195 : vector<8x128xf32>
    %cst_77 = arith.constant 0.000000e+00 : f32
    %197 = vector.broadcast %cst_77 : f32 to vector<8x128xf32>
    %198 = arith.cmpf ogt, %196, %197 : vector<8x128xf32>
    %199 = arith.extui %198 : vector<8x128xi1> to vector<8x128xi32>
    %200 = arith.sitofp %199 : vector<8x128xi32> to vector<8x128xf32>
    %201 = arith.truncf %200 : vector<8x128xf32> to vector<8x128xbf16>
    %202 = arith.index_cast %c6_i32 : i32 to index
    %c0_78 = arith.constant 0 : index
    %c0_79 = arith.constant 0 : index
    %203 = vector.load %arg5[%202, %c0_78, %c0_79] : memref<8x8x128xbf16, #tpu.memory_space<vmem>>, vector<1x8x128xbf16>
    %204 = vector.shape_cast %203 : vector<1x8x128xbf16> to vector<8x128xbf16>
    %205 = vector.shape_cast %201 : vector<8x128xbf16> to vector<1x8x128xbf16>
    tpu.vector_store %arg5[%202, %c0_78, %c0_79], %205 {strides = array<i32>} : memref<8x8x128xbf16, #tpu.memory_space<vmem>>, vector<1x8x128xbf16>,
    %c7_i32 = arith.constant 7 : i32
    %206 = arith.truncf %200 : vector<8x128xf32> to vector<8x128xbf16>
    %cst_80 = arith.constant dense<0.000000e+00> : vector<8x128xf32>
    %207 = tpu.matmul %206, %3, %cst_80 {dimension_numbers = #tpu.dot_dimension_numbers<[1], [0], [0], [1], [0, 0, 1, 1], [], []>} : vector<8x128xbf16>, vector<128x128xbf16>, vector<8x128xf32> -> vector<8x128xf32>
    %cst_81 = arith.constant 5.000000e-01 : f32
    %208 = vector.broadcast %cst_81 : f32 to vector<8x128xf32>
    %209 = arith.mulf %208, %187 : vector<8x128xf32>
    %210 = arith.index_cast %c7_i32 : i32 to index
    %c0_82 = arith.constant 0 : index
    %c0_83 = arith.constant 0 : index
    %211 = vector.load %arg2[%210, %c0_82, %c0_83] : memref<8x8x128xbf16, #tpu.memory_space<vmem>>, vector<1x8x128xbf16>
    %212 = vector.shape_cast %211 : vector<1x8x128xbf16> to vector<8x128xbf16>
    %213 = arith.extf %212 : vector<8x128xbf16> to vector<8x128xf32>
    %214 = arith.addf %209, %213 : vector<8x128xf32>
    %215 = arith.addf %214, %207 : vector<8x128xf32>
    %cst_84 = arith.constant 5.000000e-01 : f32
    %216 = vector.broadcast %cst_84 : f32 to vector<8x128xf32>
    %217 = arith.mulf %216, %194 : vector<8x128xf32>
    %cst_85 = arith.constant 1.000000e+00 : f32
    %218 = vector.broadcast %cst_85 : f32 to vector<8x128xf32>
    %219 = arith.subf %218, %200 : vector<8x128xf32>
    %220 = arith.mulf %217, %219 : vector<8x128xf32>
    %221 = arith.addf %220, %215 : vector<8x128xf32>
    %222 = arith.addf %221, %6 : vector<8x128xf32>
    %cst_86 = arith.constant 1.000000e+00 : f32
    %223 = vector.broadcast %cst_86 : f32 to vector<8x128xf32>
    %224 = arith.subf %222, %223 : vector<8x128xf32>
    %cst_87 = arith.constant 0.000000e+00 : f32
    %225 = vector.broadcast %cst_87 : f32 to vector<8x128xf32>
    %226 = arith.cmpf ogt, %224, %225 : vector<8x128xf32>
    %227 = arith.extui %226 : vector<8x128xi1> to vector<8x128xi32>
    %228 = arith.sitofp %227 : vector<8x128xi32> to vector<8x128xf32>
    %229 = arith.truncf %228 : vector<8x128xf32> to vector<8x128xbf16>
    %230 = arith.index_cast %c7_i32 : i32 to index
    %c0_88 = arith.constant 0 : index
    %c0_89 = arith.constant 0 : index
    %231 = vector.load %arg5[%230, %c0_88, %c0_89] : memref<8x8x128xbf16, #tpu.memory_space<vmem>>, vector<1x8x128xbf16>
    %232 = vector.shape_cast %231 : vector<1x8x128xbf16> to vector<8x128xbf16>
    %233 = vector.shape_cast %229 : vector<8x128xbf16> to vector<1x8x128xbf16>
    tpu.vector_store %arg5[%230, %c0_88, %c0_89], %233 {strides = array<i32>} : memref<8x8x128xbf16, #tpu.memory_space<vmem>>, vector<1x8x128xbf16>,
    %c8_i32 = arith.constant 8 : i32
    %c0_90 = arith.constant 0 : index
    %c0_91 = arith.constant 0 : index
    %234 = vector.load %arg6[%c0_90, %c0_91] : memref<8x128xf32, #tpu.memory_space<vmem>>, vector<8x128xf32>
    tpu.vector_store %arg6[%c0_90, %c0_91], %228 {strides = array<i32>} : memref<8x128xf32, #tpu.memory_space<vmem>>, vector<8x128xf32>,
    %c0_92 = arith.constant 0 : index
    %c0_93 = arith.constant 0 : index
    %235 = vector.load %arg7[%c0_92, %c0_93] : memref<8x128xf32, #tpu.memory_space<vmem>>, vector<8x128xf32>
    tpu.vector_store %arg7[%c0_92, %c0_93], %222 {strides = array<i32>} : memref<8x128xf32, #tpu.memory_space<vmem>>, vector<8x128xf32>,
    %c0_94 = arith.constant 0 : index
    %c0_95 = arith.constant 0 : index
    %236 = vector.load %arg8[%c0_94, %c0_95] : memref<8x128xf32, #tpu.memory_space<vmem>>, vector<8x128xf32>
    tpu.vector_store %arg8[%c0_94, %c0_95], %215 {strides = array<i32>} : memref<8x128xf32, #tpu.memory_space<vmem>>, vector<8x128xf32>,
    return
  }
  func.func @transform_0(%arg0: i32, %arg1: i32) -> (i32, i32, i32) {
    %c0_i32 = arith.constant 0 : i32
    %c0_i32_0 = arith.constant 0 : i32
    return %arg1, %arg0, %c0_i32 : i32, i32, i32
  }
  func.func @transform_1(%arg0: i32, %arg1: i32) -> (i32, i32) {
    %c0_i32 = arith.constant 0 : i32
    %c0_i32_0 = arith.constant 0 : i32
    %c0_i32_1 = arith.constant 0 : i32
    return %c0_i32, %c0_i32_0 : i32, i32
  }
  func.func @transform_2(%arg0: i32, %arg1: i32) -> (i32, i32) {
    %c0_i32 = arith.constant 0 : i32
    %c0_i32_0 = arith.constant 0 : i32
    %c0_i32_1 = arith.constant 0 : i32
    return %c0_i32, %c0_i32_0 : i32, i32
  }
  func.func @transform_3(%arg0: i32, %arg1: i32) -> (i32, i32, i32) {
    %c0_i32 = arith.constant 0 : i32
    %c0_i32_0 = arith.constant 0 : i32
    return %arg1, %arg0, %c0_i32 : i32, i32, i32
  }
  func.func @transform_4(%arg0: i32, %arg1: i32) -> (i32, i32) {
    %c0_i32 = arith.constant 0 : i32
    %c0_i32_0 = arith.constant 0 : i32
    return %arg0, %c0_i32 : i32, i32
  }
  func.func @transform_5(%arg0: i32, %arg1: i32) -> (i32, i32) {
    %c0_i32 = arith.constant 0 : i32
    %c0_i32_0 = arith.constant 0 : i32
    return %arg0, %c0_i32 : i32, i32
  }
  func.func @transform_6(%arg0: i32, %arg1: i32) -> (i32, i32) {
    %c0_i32 = arith.constant 0 : i32
    %c0_i32_0 = arith.constant 0 : i32
    return %arg0, %c0_i32 : i32, i32
  }
}

</mosaic_0001>

<bundles_post_ra>
// kernel: tpu_custom_call.1
= control target key start
LH: loop header
LB: loop body
LE: loop exit
PB: predicated region body
PF: predicated region fallthrough
CT: control target
= control target key end

     0   :  { %s2250_s0 = inlined_call_operand.hbm [shape: bf16[16,8,128], index: 0, kind: input, shape index: {}]   ;;  %s2251_s1 = inlined_call_operand.hbm [shape: bf16[128,128], index: 1, kind: input, shape index: {}]   ;;  %s2252_s2 = inlined_call_operand.vmem [shape: f32[1,128], index: 2, kind: input, shape index: {}]   ;;  %s2253_s3 = inlined_call_operand.hbm [shape: bf16[16,8,128], index: 3, kind: output, shape index: {0}]   ;;  %s2254_s4 = inlined_call_operand.hbm [shape: f32[8,128], index: 4, kind: output, shape index: {1}]   ;;  %s2255_s5 = inlined_call_operand.hbm [shape: f32[8,128], index: 5, kind: output, shape index: {2}]   ;;  %s2256_s6 = inlined_call_operand.hbm [shape: f32[8,128], index: 6, kind: output, shape index: {3}]  }
   0x1   :  { %2264 = sst [smem:[#allocation18_spill]] %s2251_s1 }
   0x2   :  { %12 = vsyncpa [#allocation3], 0 }
   0x3   :  { %14 = vsyncpa [#allocation3 + $0x1], 0 }
   0x4   :  { %15 = vsyncpa [#allocation6], 0 }
   0x5   :  { %16 = vsyncpa [#allocation4], 0 }
   0x6   :  { %18 = vsyncpa [#allocation4 + $0x1], 0 }
   0x7   :  { %19 = vsyncpa [#allocation9], 0 }
   0x8   :  { %20 = vsyncpa [#allocation12], 0  ;;  %s1750_s21 = smov 0   ;;  %s1752_s22 = smov 0  }
   0x9   :  { %s1754_s23 = smov 0   ;;  %s1756_s24 = smov 0  }
   0xa   :  { %s1758_s25 = smov 0   ;;  %s1760_s26 = smov 0  }
   0xb LB: > { %s1048_s27 = sadd.s32 4294967295, %s1699_s26   ;;  %s1049_s28 = sadd.s32 4294967294, %s1699_s26   ;;  %s1699_s26 = sphi %s1760_s26, %s26_s26   ;;  %s1695_s25 = sphi %s1758_s25, %s2288_s25   ;;  %s1691_s24 = sphi %s1756_s24, %s2287_s24   ;;  %s1687_s23 = sphi %s1754_s23, %s2286_s23   ;;  %s1683_s22 = sphi %s1752_s22, %s2285_s22   ;;  %s1679_s21 = sphi %s1750_s21, %s2284_s21  }
   0xc   : > { %p60_p0 = scmp.ne.s32.totalorder %s1683_s22, %s1679_s21  ;;  %p1784_p1 = scmp.eq.s32.totalorder %s1048_s27, 0 }
   0xd   : > { %p1788_p2 = scmp.eq.s32.totalorder %s1048_s27, 1  ;;  %p134_p3 = scmp.eq.s32.totalorder %s1049_s28, 1 }
   0xe   : > { %s2265_s29 = scalar_select %p1784_p1, 1, 0 }
   0xf   : > { %s2266_s30 = scalar_select %p1788_p2, 1, 0 }
  0x10   : > { %p1794_p4 = por %p1784_p1, %p60_p0  ;;  %p1050_p5 = scmp.ge.s32.totalorder %s1699_s26, 1 }
  0x11   : > { %p1799_p6 = por %p134_p3, %p60_p0  ;;  %p219_p7 = scmp.lt.s32.totalorder %s1699_s26, 3 }
  0x12   : > { %s2267_s7 = scalar_select %p1794_p4, 1, 0 }
  0x13   : > { %s2268_s8 = scalar_select %p1799_p6, 1, 0 }
  0x14   : > { %p1804_p8 = pnand %p1050_p5, %p219_p7  ;;  %s1701_s10 = smov [#allocation5]  }
  0x15   : > { %s231_s11 = sshll.u32 %s1701_s10, 4  ;;  %s35_s13 = sadd.s32 1, %s1695_s25  ;;  %s232_s11 = int_to_ptr.vmem [resolvable:$true] %s231_s11 }
  0x16   : > { %s2269_s9 = scalar_select %p1804_p8, 1, 0 }
  0x17   : > { %p1379_p9 = pneg %p1804_p8  ;;  %s2271_s1 = sld [smem:[#allocation18_spill]] }
  0x19   : > { %p1813_p11 = pnand %p1379_p9, %p1784_p1 }
  0x1b   : > { %p1471_p13 = pneg %p1813_p11 }
  0x1d   : > { %s1469_s16 = scalar_lea.hbm %s2271_s1, 1024 }
  0x1e   : > { %p1470_p12 = scmp.ne.s32.totalorder %s2271_s1, %s1469_s16  ;;  %p1476_p5 = scmp.lt.u32.totalorder %s1469_s16, %s2271_s1 }
  0x20   : > { %p1472_p0 = pnand %p1471_p13, %p1470_p12 }
  0x22   : > { %p1473_p3 = pneg %p1472_p0 }
  0x24   : > { %p1478_p7 = pnand %p1476_p5, %p1473_p3 }
  0x26   : > { %1481 = shalt.err (!%p1478_p7)
}
  0x27   : > { %s1482_s27 = scalar_lea.vmem %s232_s11, 1024  ;;  %p1490_p1 = scmp.lt.s32.totalorder %s232_s11, %s232_s11 }
  0x28   : > { %p1483_p9 = scmp.ne.s32.totalorder %s232_s11, %s1482_s27  ;;  %p1491_p4 = scmp.lt.s32.totalorder %s1482_s27, %s1482_s27 }
  0x2a   : > { %p1485_p10 = pnand %p1483_p9, %p1471_p13  ;;  %p1492_p8 = por %p1491_p4, %p1490_p1 }
  0x2c   : > { %p1486_p6 = pneg %p1485_p10 }
  0x2e   : > { %p1493_p2 = pnand %p1492_p8, %p1486_p6 }
  0x30   : > { %1496 = shalt.err (!%p1493_p2)
}
  0x31   : > { %s2262_s28 = smov 64   ;;  %s2263_s10 = smov 4  }
  0x32   : > { %1382 = dma.hbm_to_vmem [thread:$0]  (!%p1813_p11), %s2271_s1, 1024, %s232_s11, [#allocation6], %s2262_s28, %s2262_s28, %s2263_s10  }
  0x33   : > { %p36_p1 = scmp.ge.s32.totalorder %s35_s13, 2  ;;  %s47_s16 = sadd.s32 1, %s1687_s23 }
  0x34   : > { %p54_p2 = scmp.ne.s32.totalorder %s1687_s23, %s1683_s22  ;;  %p55_p4 = scmp.eq.s32.totalorder %s1699_s26, 0 }
  0x35   : > { %s2290_s13 = smov (%p36_p1, %s35_s13), 0  ;;  %p2273_p8 = scmp.ne.s32.totalorder %s2266_s30, 0 }
  0x36   : > { %p1843_p6 = por %p55_p4, %p54_p2  ;;  %s42_s18 = ssub.s32 %s1695_s25, %s2290_s13 }
  0x37   : > { %p1849_p10 = por %p2273_p8, %p54_p2  ;;  %p1392_p12 = scmp.lt.s32.totalorder %s1699_s26, 2 }
  0x38   : > { %p45_p11 = scmp.eq.s32.totalorder %s42_s18, 0  ;;  %s248_s11 = sand.u32 1, %s1687_s23  }
  0x39   : > { %s1053_s19 = sshll.u32 %s248_s11, 5  ;;  %s1125_s27 = sshll.u32 %s1695_s25, 9 }
  0x3a   : > { %s1858_s20 = scalar_select %p45_p11, %s1687_s23, %s47_s16  }
  0x3b   : > { %s1864_s28 = scalar_lea.hbm %s2250_s0, %s1125_s27  ;;  %s252_s10 = scalar_lea.vmem [#allocation2], %s1053_s19 }
  0x3c   : > { %s260_s1 = sshll.u32 %s252_s10, 4  ;;  %p1870_p13 = pnand %p1392_p12, %p1843_p6  ;;  %s1866_s1 = int_to_ptr.vmem [resolvable:$true] %s260_s1 }
  0x3d   : > { %s1874_s16 = scalar_lea.sflag [#allocation3], %s248_s11  ;;  %s1497_s14 = scalar_lea.hbm %s1864_s28, 512 }
  0x3e   : > { %p1498_p0 = scmp.ne.s32.totalorder %s1864_s28, %s1497_s14  ;;  %p1499_p3 = pneg %p1870_p13 }
  0x3f   : > { %s1502_s17 = scalar_lea.hbm %s2250_s0, 1024  ;;  %p1503_p9 = scmp.lt.u32.totalorder %s1864_s28, %s2250_s0 }
  0x40   : > { %p1500_p5 = pnand %p1499_p3, %p1498_p0  ;;  %p1504_p1 = scmp.lt.u32.totalorder %s1502_s17, %s1497_s14 }
  0x41   : > { %p1506_p4 = scmp.lt.u32.totalorder %s1497_s14, %s1864_s28 }
  0x42   : > { %p1501_p7 = pneg %p1500_p5  ;;  %p1505_p2 = por %p1504_p1, %p1503_p9 }
  0x44   : > { %p1507_p6 = por %p1506_p4, %p1505_p2 }
  0x46   : > { %p1508_p8 = pnand %p1507_p6, %p1501_p7 }
  0x48   : > { %1511 = shalt.err (!%p1508_p8)
}
  0x49   : > { %s1512_s11 = scalar_lea.vmem %s1866_s1, 512  ;;  %s1704_s10 = smov [#allocation2]  }
  0x4a   : > { %p1513_p12 = scmp.ne.s32.totalorder %s1866_s1, %s1512_s11  ;;  %s1517_s19 = sshll.u32 %s1704_s10, 4  ;;  %s1518_s19 = int_to_ptr.vmem [resolvable:$false] %s1517_s19 }
  0x4b   : > { %s1519_s27 = scalar_lea.vmem %s1518_s19, 1024  ;;  %p1520_p5 = scmp.lt.s32.totalorder %s1866_s1, %s1518_s19 }
  0x4c   : > { %p1515_p11 = pnand %p1513_p12, %p1499_p3  ;;  %p1521_p9 = scmp.lt.s32.totalorder %s1519_s27, %s1512_s11 }
  0x4e   : > { %p1516_p0 = pneg %p1515_p11  ;;  %p1522_p1 = por %p1521_p9, %p1520_p5 }
  0x50   : > { %p1523_p2 = pnand %p1522_p1, %p1516_p0 }
  0x52   : > { %1526 = shalt.err (!%p1523_p2)
}
  0x53   : > { %s2276_s14 = smov 4   ;;  %s2277_s17 = smov 64  }
  0x54   : > { %1386 = dma.hbm_to_vmem [thread:$0]  (!%p1870_p13), %s1864_s28, 512, %s1866_s1, %s1874_s16, %s2277_s17, %s2277_s17, %s2276_s14  }
  0x55   : > { %p2278_p3 = scmp.ne.s32.totalorder %s2269_s9, 0 }
  0x56   : > { %s1908_s15 = sand.u32 (!%p2278_p3), 1, %s1683_s22   ;;  %p2279_p7 = scmp.ne.s32.totalorder (!%p2278_p3), %s2267_s7, 0 }
  0x57   : > { %272 = sbr.rel (%p2278_p3) target bundleno = 1994 (0x7ca), region = 32  ;;  %s1057_s11 = sshll.u32 (!%p2278_p3), %s1908_s15, 5 }
  0x58   : > { %s275_s10 = scalar_lea.sflag (!%p2278_p3), [#allocation3], %s1908_s15  ;;  %s1912_s19 = scalar_lea.vmem (!%p2278_p3), [#allocation2], %s1057_s11 }
  0x5e   : > { %1658 = dma.done.wait (%p2279_p7), %s275_s10, 512  }
  0x5f   : > { %1660 = vsyncadd (%p2279_p7), %s275_s10, 4294966784  ;;  %p2280_p13 = scmp.ne.s32.totalorder %s2265_s29, 0 }
  0x61   : > { %1662 = dma.done.wait (%p2280_p13), [#allocation6], 1024  }
  0x62   : > { %1664 = vsyncadd (%p2280_p13), [#allocation6], 4294966272  ;;  %s1922_s1 = scalar_lea.vmem [#allocation7], %s1057_s11  ;;  %p1060_p4 = scmp.ne.s32.totalorder %s1691_s24, 0 }
  0x63   : > { %v1705_v0 = vmov (!%p1060_p4), 0.0  }
  0x64   : > { %317 = sbr.rel (%p1060_p4) target bundleno = 107 (0x6b), region = 44  ;;  %318 = vst [vmem:[#allocation8] sm:$0xff] (!%p1060_p4), %v1705_v0  ;;  %319 = vst [vmem:[#allocation10] sm:$0xff] (!%p1060_p4), %v1705_v0 }
  0x65   : > { %320 = vst [vmem:[#allocation11] sm:$0xff] (!%p1060_p4), %v1705_v0 }
  0x6b PF: > { %v1925_v1 = vld [vmem:[#allocation5] sm:$0xff]   ;;  %v1706_v2 = vmov 0.0   ;;  %v1930_v3 = vld [vmem:[#allocation5 + $0x8] sm:$0xff]   ;;  %vm1707_vm0 = vmmov 0   ;;  %v1940_v4 = vld [vmem:[#allocation5 + $0x10] sm:$0xff]   ;;  %s1709_s9 = smov [#allocation11]  }
  0x6c   : > { %1199 = vmatprep.subr.bf16.mxu0 %v1706_v2  ;;  %1219 = vmatprep.subr.bf16.mxu1 %v1706_v2  ;;  %v1946_v5 = vld [vmem:[#allocation5 + $0x18] sm:$0xff]   ;;  %v1952_v6 = vld [vmem:[#allocation5 + $0x20] sm:$0xff]   ;;  %v1958_v7 = vld [vmem:[#allocation5 + $0x28] sm:$0xff]   ;;  %v1708_v35 = vmov 1.0|1.0   ;;  %s918_s28 = sshll.u32 %s1709_s9, 4  ;;  %s919_s28 = int_to_ptr.vmem [resolvable:$true] %s918_s28 }
  0x6d   : > { %1200 = vmatpush3.bf16.msra.mxu0 %v1925_v1  ;;  %1215 = vmatprep.mubr.msk.bf16.mxu0 %vm1707_vm0, %v1706_v2  ;;  %v1964_v8 = vld [vmem:[#allocation5 + $0x30] sm:$0xff]   ;;  %v1970_v9 = vld [vmem:[#allocation5 + $0x38] sm:$0xff]   ;;  %v344_v10 = vld [vmem:[#allocation8] sm:$0xff]  ;;  %s1527_s18 = scalar_lea.vmem %s919_s28, 128  ;;  %p2281_p8 = scmp.ne.s32.totalorder %s2266_s30, 0 }
  0x6e   : > { %1201 = vmatprep.subr.bf16.mxu0 %v1706_v2  ;;  %1220 = vmatpush3.bf16.msra.mxu1 %v1925_v1  ;;  %v347_v11 = vpack.c.bf16 %v344_v10, %v344_v10  ;;  %v346_v12 = vld [vmem:[#allocation11] sm:$0xff]  ;;  %v437_v13 = vld [vmem:[%s1912_s19] sm:$0xff]   ;;  %v345_v14 = vld [vmem:[#allocation10] sm:$0xff]  ;;  %v442_v18 = vsub.f32 1.0, %v344_v10  ;;  %p1528_p6 = scmp.ne.s32.totalorder %s919_s28, %s1527_s18  ;;  %p1534_p0 = scmp.lt.s32.totalorder %s919_s28, %s919_s28 }
  0x6f   : > { %1221 = vmatprep.subr.bf16.mxu1 %v1706_v2  ;;  %1235 = vmatprep.mubr.msk.bf16.mxu1 %vm1707_vm0, %v1706_v2  ;;  %v436_v15 = vmul.f32 0.5, %v346_v12  ;;  %v438_v16 = vunpack.c.l.bf16 %v437_v13  ;;  %v441_v17 = vmul.f32 0.5, %v345_v14  ;;  %v495_v24 = vunpack.c.h.bf16 %v437_v13  ;;  %v2001_v25 = vld [vmem:[%s2252_s2] ss:$0 sm:$0xff]  ;;  %v1080_v52 = vld [vmem:[%s1912_s19 + $0x8] sm:$0xff]   ;;  %p1535_p5 = scmp.lt.s32.totalorder %s1527_s18, %s1527_s18 }
  0x70   : > { %v553_v54 = vunpack.c.l.bf16 %v1080_v52  ;;  %p1529_p12 = pnand %p1528_p6, %p2281_p8 }
  0x71   : > { %1202 = vmatpush3.bf16.msra.mxu0 %v1930_v3  ;;  %v439_v19 = vadd.f32 %v438_v16, %v436_v15  ;;  %v443_v20 = vmul.f32 %v442_v18, %v441_v17  ;;  %v611_v15 = vunpack.c.h.bf16 %v1080_v52  ;;  %p1536_p9 = por %p1535_p5, %p1534_p0 }
  0x72   : > { %1203 = vmatprep.subr.bf16.mxu0 %v1706_v2  ;;  %1222 = vmatpush3.bf16.msra.mxu1 %v1930_v3  ;;  %p1530_p11 = pneg %p1529_p12 }
  0x73   : > { %1223 = vmatprep.subr.bf16.mxu1 %v1706_v2 }
  0x74   : > { %p1537_p1 = pnand %p1536_p9, %p1530_p11 }
  0x75   : > { %1204 = vmatpush3.bf16.msra.mxu0 %v1940_v4 }
  0x76   : > { %1205 = vmatprep.subr.bf16.mxu0 %v1706_v2  ;;  %1224 = vmatpush3.bf16.msra.mxu1 %v1940_v4 }
  0x77   : > { %1225 = vmatprep.subr.bf16.mxu1 %v1706_v2 }
  0x79   : > { %1206 = vmatpush3.bf16.msra.mxu0 %v1946_v5 }
  0x7a   : > { %1207 = vmatprep.subr.bf16.mxu0 %v1706_v2  ;;  %1226 = vmatpush3.bf16.msra.mxu1 %v1946_v5 }
  0x7b   : > { %1227 = vmatprep.subr.bf16.mxu1 %v1706_v2 }
  0x7d   : > { %1208 = vmatpush3.bf16.msra.mxu0 %v1952_v6 }
  0x7e   : > { %1209 = vmatprep.subr.bf16.mxu0 %v1706_v2  ;;  %1228 = vmatpush3.bf16.msra.mxu1 %v1952_v6 }
  0x7f   : > { %1229 = vmatprep.subr.bf16.mxu1 %v1706_v2 }
  0x81   : > { %1210 = vmatpush3.bf16.msra.mxu0 %v1958_v7 }
  0x82   : > { %1211 = vmatprep.subr.bf16.mxu0 %v1706_v2  ;;  %1230 = vmatpush3.bf16.msra.mxu1 %v1958_v7 }
  0x83   : > { %1231 = vmatprep.subr.bf16.mxu1 %v1706_v2 }
  0x85   : > { %1212 = vmatpush3.bf16.msra.mxu0 %v1964_v8 }
  0x86   : > { %1213 = vmatprep.subr.bf16.mxu0 %v1706_v2  ;;  %1232 = vmatpush3.bf16.msra.mxu1 %v1964_v8 }
  0x87   : > { %1233 = vmatprep.subr.bf16.mxu1 %v1706_v2 }
  0x89   : > { %1214 = vmatpush3.bf16.msra.mxu0 %v1970_v9 }
  0x8a   : > { %1234 = vmatpush3.bf16.msra.mxu1 %v1970_v9  ;;  %1239 = vmatprep.subr.bf16.mxu0 %v1706_v2 }
  0x8b   : > { %1259 = vmatprep.subr.bf16.mxu1 %v1706_v2 }
  0x8c   : > { %1216 = vmatmul.mubr.bf16.vlgmr.msra.gmra.mrb[0].mxu0 %v347_v11 }
  0x8d   : > { %1240 = vmatpush3.bf16.msra.mxu0 %v1925_v1  ;;  %1255 = vmatprep.mubr.msk.bf16.mxu0 %vm1707_vm0, %v1706_v2 }
  0x8e   : > { %1241 = vmatprep.subr.bf16.mxu0 %v1706_v2 }
  0x91   : > { %1242 = vmatpush3.bf16.msra.mxu0 %v1930_v3 }
  0x92   : > { %1243 = vmatprep.subr.bf16.mxu0 %v1706_v2 }
  0x95   : > { %1244 = vmatpush3.bf16.msra.mxu0 %v1940_v4 }
  0x96   : > { %1245 = vmatprep.subr.bf16.mxu0 %v1706_v2 }
  0x99   : > { %1246 = vmatpush3.bf16.msra.mxu0 %v1946_v5 }
  0x9a   : > { %1247 = vmatprep.subr.bf16.mxu0 %v1706_v2 }
  0x9d   : > { %1248 = vmatpush3.bf16.msra.mxu0 %v1952_v6 }
  0x9e   : > { %1249 = vmatprep.subr.bf16.mxu0 %v1706_v2 }
  0xa1   : > { %1250 = vmatpush3.bf16.msra.mxu0 %v1958_v7 }
  0xa2   : > { %1251 = vmatprep.subr.bf16.mxu0 %v1706_v2 }
  0xa5   : > { %1252 = vmatpush3.bf16.msra.mxu0 %v1964_v8 }
  0xa6   : > { %1253 = vmatprep.subr.bf16.mxu0 %v1706_v2 }
  0xa9   : > { %1254 = vmatpush3.bf16.msra.mxu0 %v1970_v9 }
  0xaa   : > { %1279 = vmatprep.subr.bf16.mxu0 %v1706_v2 }
 0x15f   : > { %v430_v21 = vpop.f32.mrb[0].mxu0 }
 0x160   : > { %v440_v22 = vadd.f32 %v439_v19, %v430_v21  ;;  %v1217_v23 = vpop.f32.mrb[1].mxu0 }
 0x161   : > { %v433_v26 = vpop.f32.mrb[2].mxu0 }
 0x162   : > { %v444_v27 = vadd.f32 %v443_v20, %v440_v22  ;;  %v492_v28 = vmul.f32 0.5, %v440_v22  ;;  %v1218_v29 = vpop.f32.mrb[3].mxu0 }
 0x164   : > { %v445_v30 = vadd.f32 %v2001_v25, %v444_v27  ;;  %v496_v31 = vadd.f32 %v495_v24, %v492_v28 }
 0x166   : > { %v1070_v32 = vadd.f32 -1.0, %v445_v30  ;;  %v498_v36 = vmul.f32 0.5, %v445_v30 }
 0x168   : > { %vm447_vm1 = vcmp.gt.f32.partialorder %v1070_v32, 0.0 }
 0x169   : > { %v1071_v33 = vsel %vm447_vm1, 1.0, %v1706_v2  ;;  %vm1072_vm2 = vmpackc.low %vm447_vm1, %vm447_vm1 }
 0x16a   : > { %v450_v34 = vpack.c.bf16 %v1071_v33, %v1071_v33  ;;  %1236 = vmatmul.mubr.msk.bf16.vlgmr.msra.gmra.mrb[0].mxu1 %vm1072_vm2, %v1708_v35  ;;  %v499_v37 = vsub.f32 1.0, %v1071_v33 }
 0x16b   : > { %1260 = vmatpush3.bf16.msra.mxu1 %v1925_v1  ;;  %1275 = vmatprep.mubr.msk.bf16.mxu1 %vm1707_vm0, %v1706_v2 }
 0x16c   : > { %451 = vst [vmem:[%s1922_s1] sm:$0xf] %v450_v34  ;;  %v500_v38 = vmul.f32 %v499_v37, %v498_v36  ;;  %1261 = vmatprep.subr.bf16.mxu1 %v1706_v2 }
 0x16f   : > { %1262 = vmatpush3.bf16.msra.mxu1 %v1930_v3 }
 0x170   : > { %1263 = vmatprep.subr.bf16.mxu1 %v1706_v2 }
 0x173   : > { %1264 = vmatpush3.bf16.msra.mxu1 %v1940_v4 }
 0x174   : > { %1265 = vmatprep.subr.bf16.mxu1 %v1706_v2 }
 0x177   : > { %1266 = vmatpush3.bf16.msra.mxu1 %v1946_v5 }
 0x178   : > { %1267 = vmatprep.subr.bf16.mxu1 %v1706_v2 }
 0x17b   : > { %1268 = vmatpush3.bf16.msra.mxu1 %v1952_v6 }
 0x17c   : > { %1269 = vmatprep.subr.bf16.mxu1 %v1706_v2 }
 0x17f   : > { %1270 = vmatpush3.bf16.msra.mxu1 %v1958_v7 }
 0x180   : > { %1271 = vmatprep.subr.bf16.mxu1 %v1706_v2 }
 0x183   : > { %1272 = vmatpush3.bf16.msra.mxu1 %v1964_v8 }
 0x184   : > { %1273 = vmatprep.subr.bf16.mxu1 %v1706_v2 }
 0x187   : > { %1274 = vmatpush3.bf16.msra.mxu1 %v1970_v9 }
 0x188   : > { %1299 = vmatprep.subr.bf16.mxu1 %v1706_v2 }
 0x23d   : > { %v486_v39 = vpop.f32.mrb[0].mxu1 }
 0x23e   : > { %v497_v40 = vadd.f32 %v496_v31, %v486_v39  ;;  %v1237_v41 = vpop.f32.mrb[1].mxu1  ;;  %v1092_v31 = vld [vmem:[%s1912_s19 + $0x10] sm:$0xff]  }
 0x23f   : > { %v489_v42 = vpop.f32.mrb[2].mxu1  ;;  %v669_v33 = vunpack.c.l.bf16 %v1092_v31 }
 0x240   : > { %v501_v43 = vadd.f32 %v500_v38, %v497_v40  ;;  %v1238_v44 = vpop.f32.mrb[3].mxu1  ;;  %v550_v53 = vmul.f32 0.5, %v497_v40 }
 0x242   : > { %v502_v45 = vadd.f32 %v2001_v25, %v501_v43  ;;  %v554_v55 = vadd.f32 %v553_v54, %v550_v53 }
 0x244   : > { %v1075_v46 = vadd.f32 -1.0, %v502_v45  ;;  %v556_v49 = vmul.f32 0.5, %v502_v45 }
 0x246   : > { %vm504_vm3 = vcmp.gt.f32.partialorder %v1075_v46, 0.0 }
 0x247   : > { %vm1078_vm4 = vmpackc.low %vm504_vm3, %vm504_vm3  ;;  %v1076_v47 = vsel %vm504_vm3, 1.0, %v1706_v2 }
 0x248   : > { %1256 = vmatmul.mubr.msk.bf16.vlgmr.msra.gmra.mrb[4].mxu0 %vm1078_vm4, %v1708_v35  ;;  %v507_v48 = vpack.c.bf16 %v1076_v47, %v1076_v47  ;;  %v557_v50 = vsub.f32 1.0, %v1076_v47 }
 0x249   : > { %1280 = vmatpush3.bf16.msra.mxu0 %v1925_v1  ;;  %1295 = vmatprep.mubr.msk.bf16.mxu0 %vm1707_vm0, %v1706_v2 }
 0x24a   : > { %1077 = vst [vmem:[%s1922_s1 + $0x4] sm:$0xf] %v507_v48  ;;  %v558_v51 = vmul.f32 %v557_v50, %v556_v49  ;;  %1281 = vmatprep.subr.bf16.mxu0 %v1706_v2 }
 0x24d   : > { %1282 = vmatpush3.bf16.msra.mxu0 %v1930_v3 }
 0x24e   : > { %1283 = vmatprep.subr.bf16.mxu0 %v1706_v2 }
 0x251   : > { %1284 = vmatpush3.bf16.msra.mxu0 %v1940_v4 }
 0x252   : > { %1285 = vmatprep.subr.bf16.mxu0 %v1706_v2 }
 0x255   : > { %1286 = vmatpush3.bf16.msra.mxu0 %v1946_v5 }
 0x256   : > { %1287 = vmatprep.subr.bf16.mxu0 %v1706_v2 }
 0x259   : > { %1288 = vmatpush3.bf16.msra.mxu0 %v1952_v6 }
 0x25a   : > { %1289 = vmatprep.subr.bf16.mxu0 %v1706_v2 }
 0x25d   : > { %1290 = vmatpush3.bf16.msra.mxu0 %v1958_v7 }
 0x25e   : > { %1291 = vmatprep.subr.bf16.mxu0 %v1706_v2 }
 0x261   : > { %1292 = vmatpush3.bf16.msra.mxu0 %v1964_v8 }
 0x262   : > { %1293 = vmatprep.subr.bf16.mxu0 %v1706_v2 }
 0x265   : > { %1294 = vmatpush3.bf16.msra.mxu0 %v1970_v9 }
 0x266   : > { %1319 = vmatprep.subr.bf16.mxu0 %v1706_v2 }
 0x31b   : > { %v544_v56 = vpop.f32.mrb[4].mxu0 }
 0x31c   : > { %v555_v57 = vadd.f32 %v554_v55, %v544_v56  ;;  %v1257_v58 = vpop.f32.mrb[5].mxu0 }
 0x31d   : > { %v547_v59 = vpop.f32.mrb[6].mxu0 }
 0x31e   : > { %v559_v60 = vadd.f32 %v558_v51, %v555_v57  ;;  %v1258_v61 = vpop.f32.mrb[7].mxu0  ;;  %v608_v14 = vmul.f32 0.5, %v555_v57  ;;  %v1104_v57 = vld [vmem:[%s1912_s19 + $0x18] sm:$0xff]  }
 0x31f   : > { %v785_v59 = vunpack.c.l.bf16 %v1104_v57 }
 0x320   : > { %v560_v62 = vadd.f32 %v2001_v25, %v559_v60  ;;  %v612_v16 = vadd.f32 %v611_v15, %v608_v14 }
 0x322   : > { %v1081_v63 = vadd.f32 -1.0, %v560_v62  ;;  %v614_v11 = vmul.f32 0.5, %v560_v62 }
 0x324   : > { %vm562_vm5 = vcmp.gt.f32.partialorder %v1081_v63, 0.0 }
 0x325   : > { %vm1084_vm6 = vmpackc.low %vm562_vm5, %vm562_vm5  ;;  %v1082_v0 = vsel %vm562_vm5, 1.0, %v1706_v2 }
 0x326   : > { %1276 = vmatmul.mubr.msk.bf16.vlgmr.msra.gmra.mrb[4].mxu1 %vm1084_vm6, %v1708_v35  ;;  %v565_v10 = vpack.c.bf16 %v1082_v0, %v1082_v0  ;;  %v615_v12 = vsub.f32 1.0, %v1082_v0 }
 0x327   : > { %1300 = vmatpush3.bf16.msra.mxu1 %v1925_v1  ;;  %1315 = vmatprep.mubr.msk.bf16.mxu1 %vm1707_vm0, %v1706_v2 }
 0x328   : > { %1083 = vst [vmem:[%s1922_s1 + $0x8] sm:$0xf] %v565_v10  ;;  %v616_v13 = vmul.f32 %v615_v12, %v614_v11  ;;  %1301 = vmatprep.subr.bf16.mxu1 %v1706_v2 }
 0x32b   : > { %1302 = vmatpush3.bf16.msra.mxu1 %v1930_v3 }
 0x32c   : > { %1303 = vmatprep.subr.bf16.mxu1 %v1706_v2 }
 0x32f   : > { %1304 = vmatpush3.bf16.msra.mxu1 %v1940_v4 }
 0x330   : > { %1305 = vmatprep.subr.bf16.mxu1 %v1706_v2 }
 0x333   : > { %1306 = vmatpush3.bf16.msra.mxu1 %v1946_v5 }
 0x334   : > { %1307 = vmatprep.subr.bf16.mxu1 %v1706_v2 }
 0x337   : > { %1308 = vmatpush3.bf16.msra.mxu1 %v1952_v6 }
 0x338   : > { %1309 = vmatprep.subr.bf16.mxu1 %v1706_v2 }
 0x33b   : > { %1310 = vmatpush3.bf16.msra.mxu1 %v1958_v7 }
 0x33c   : > { %1311 = vmatprep.subr.bf16.mxu1 %v1706_v2 }
 0x33f   : > { %1312 = vmatpush3.bf16.msra.mxu1 %v1964_v8 }
 0x340   : > { %1313 = vmatprep.subr.bf16.mxu1 %v1706_v2 }
 0x343   : > { %1314 = vmatpush3.bf16.msra.mxu1 %v1970_v9 }
 0x344   : > { %1339 = vmatprep.subr.bf16.mxu1 %v1706_v2 }
 0x3f9   : > { %v602_v17 = vpop.f32.mrb[4].mxu1 }
 0x3fa   : > { %v613_v18 = vadd.f32 %v612_v16, %v602_v17  ;;  %v1277_v19 = vpop.f32.mrb[5].mxu1 }
 0x3fb   : > { %v605_v20 = vpop.f32.mrb[6].mxu1 }
 0x3fc   : > { %v617_v21 = vadd.f32 %v616_v13, %v613_v18  ;;  %v1278_v22 = vpop.f32.mrb[7].mxu1  ;;  %v666_v32 = vmul.f32 0.5, %v613_v18  ;;  %v843_v20 = vunpack.c.h.bf16 %v1104_v57 }
 0x3fe   : > { %v618_v23 = vadd.f32 %v2001_v25, %v617_v21  ;;  %v670_v34 = vadd.f32 %v669_v33, %v666_v32 }
 0x400   : > { %v1087_v24 = vadd.f32 -1.0, %v618_v23  ;;  %v672_v28 = vmul.f32 0.5, %v618_v23 }
 0x402   : > { %vm620_vm7 = vcmp.gt.f32.partialorder %v1087_v24, 0.0 }
 0x403   : > { %vm1090_vm8 = vmpackc.low %vm620_vm7, %vm620_vm7  ;;  %v1088_v26 = vsel %vm620_vm7, 1.0, %v1706_v2 }
 0x404   : > { %1296 = vmatmul.mubr.msk.bf16.vlgmr.msra.gmra.mrb[8].mxu0 %vm1090_vm8, %v1708_v35  ;;  %v623_v27 = vpack.c.bf16 %v1088_v26, %v1088_v26  ;;  %v673_v29 = vsub.f32 1.0, %v1088_v26 }
 0x405   : > { %1320 = vmatpush3.bf16.msra.mxu0 %v1925_v1  ;;  %1335 = vmatprep.mubr.msk.bf16.mxu0 %vm1707_vm0, %v1706_v2 }
 0x406   : > { %1089 = vst [vmem:[%s1922_s1 + $0xc] sm:$0xf] %v623_v27  ;;  %v674_v30 = vmul.f32 %v673_v29, %v672_v28  ;;  %1321 = vmatprep.subr.bf16.mxu0 %v1706_v2 }
 0x409   : > { %1322 = vmatpush3.bf16.msra.mxu0 %v1930_v3 }
 0x40a   : > { %1323 = vmatprep.subr.bf16.mxu0 %v1706_v2 }
 0x40d   : > { %1324 = vmatpush3.bf16.msra.mxu0 %v1940_v4 }
 0x40e   : > { %1325 = vmatprep.subr.bf16.mxu0 %v1706_v2 }
 0x411   : > { %1326 = vmatpush3.bf16.msra.mxu0 %v1946_v5 }
 0x412   : > { %1327 = vmatprep.subr.bf16.mxu0 %v1706_v2 }
 0x415   : > { %1328 = vmatpush3.bf16.msra.mxu0 %v1952_v6 }
 0x416   : > { %1329 = vmatprep.subr.bf16.mxu0 %v1706_v2 }
 0x419   : > { %1330 = vmatpush3.bf16.msra.mxu0 %v1958_v7 }
 0x41a   : > { %1331 = vmatprep.subr.bf16.mxu0 %v1706_v2 }
 0x41d   : > { %1332 = vmatpush3.bf16.msra.mxu0 %v1964_v8 }
 0x41e   : > { %1333 = vmatprep.subr.bf16.mxu0 %v1706_v2 }
 0x421   : > { %1334 = vmatpush3.bf16.msra.mxu0 %v1970_v9 }
 0x4d7   : > { %v660_v36 = vpop.f32.mrb[8].mxu0 }
 0x4d8   : > { %v671_v37 = vadd.f32 %v670_v34, %v660_v36  ;;  %v1297_v38 = vpop.f32.mrb[9].mxu0 }
 0x4d9   : > { %v663_v39 = vpop.f32.mrb[10].mxu0 }
 0x4da   : > { %v675_v40 = vadd.f32 %v674_v30, %v671_v37  ;;  %v1298_v41 = vpop.f32.mrb[11].mxu0 }
 0x4dc   : > { %v676_v42 = vadd.f32 %v2001_v25, %v675_v40 }
 0x4de   : > { %v1093_v43 = vadd.f32 -1.0, %v676_v42  ;;  %v730_v46 = vmul.f32 0.5, %v676_v42 }
 0x4e0   : > { %vm678_vm9 = vcmp.gt.f32.partialorder %v1093_v43, 0.0 }
 0x4e1   : > { %vm1096_vm10 = vmpackc.low %vm678_vm9, %vm678_vm9  ;;  %v1094_v44 = vsel %vm678_vm9, 1.0, %v1706_v2 }
 0x4e2   : > { %1316 = vmatmul.mubr.msk.bf16.vlgmr.msra.gmra.mrb[8].mxu1 %vm1096_vm10, %v1708_v35  ;;  %v681_v45 = vpack.c.bf16 %v1094_v44, %v1094_v44  ;;  %v731_v47 = vsub.f32 1.0, %v1094_v44 }
 0x4e3   : > { %1340 = vmatpush3.bf16.msra.mxu1 %v1925_v1  ;;  %1355 = vmatprep.mubr.msk.bf16.mxu1 %vm1707_vm0, %v1706_v2  ;;  %v724_v1 = vmul.f32 0.5, %v671_v37 }
 0x4e4   : > { %1095 = vst [vmem:[%s1922_s1 + $0x10] sm:$0xf] %v681_v45  ;;  %v732_v48 = vmul.f32 %v731_v47, %v730_v46  ;;  %1341 = vmatprep.subr.bf16.mxu1 %v1706_v2 }
 0x4e7   : > { %1342 = vmatpush3.bf16.msra.mxu1 %v1930_v3  ;;  %v727_v3 = vunpack.c.h.bf16 %v1092_v31 }
 0x4e8   : > { %1343 = vmatprep.subr.bf16.mxu1 %v1706_v2 }
 0x4eb   : > { %1344 = vmatpush3.bf16.msra.mxu1 %v1940_v4  ;;  %v728_v4 = vadd.f32 %v727_v3, %v724_v1 }
 0x4ec   : > { %1345 = vmatprep.subr.bf16.mxu1 %v1706_v2 }
 0x4ef   : > { %1346 = vmatpush3.bf16.msra.mxu1 %v1946_v5 }
 0x4f0   : > { %1347 = vmatprep.subr.bf16.mxu1 %v1706_v2 }
 0x4f3   : > { %1348 = vmatpush3.bf16.msra.mxu1 %v1952_v6 }
 0x4f4   : > { %1349 = vmatprep.subr.bf16.mxu1 %v1706_v2 }
 0x4f7   : > { %1350 = vmatpush3.bf16.msra.mxu1 %v1958_v7 }
 0x4f8   : > { %1351 = vmatprep.subr.bf16.mxu1 %v1706_v2 }
 0x4fb   : > { %1352 = vmatpush3.bf16.msra.mxu1 %v1964_v8 }
 0x4fc   : > { %1353 = vmatprep.subr.bf16.mxu1 %v1706_v2 }
 0x4ff   : > { %1354 = vmatpush3.bf16.msra.mxu1 %v1970_v9 }
 0x5b5   : > { %v718_v5 = vpop.f32.mrb[8].mxu1 }
 0x5b6   : > { %v729_v49 = vadd.f32 %v728_v4, %v718_v5  ;;  %v1317_v6 = vpop.f32.mrb[9].mxu1 }
 0x5b7   : > { %v721_v50 = vpop.f32.mrb[10].mxu1 }
 0x5b8   : > { %v733_v51 = vadd.f32 %v732_v48, %v729_v49  ;;  %v1318_v52 = vpop.f32.mrb[11].mxu1  ;;  %v782_v58 = vmul.f32 0.5, %v729_v49 }
 0x5ba   : > { %v734_v7 = vadd.f32 %v2001_v25, %v733_v51  ;;  %v786_v60 = vadd.f32 %v785_v59, %v782_v58 }
 0x5bc   : > { %v1099_v53 = vadd.f32 -1.0, %v734_v7  ;;  %v788_v54 = vmul.f32 0.5, %v734_v7 }
 0x5be   : > { %vm736_vm11 = vcmp.gt.f32.partialorder %v1099_v53, 0.0 }
 0x5bf   : > { %vm1102_vm12 = vmpackc.low %vm736_vm11, %vm736_vm11  ;;  %v1100_v8 = vsel %vm736_vm11, 1.0, %v1706_v2 }
 0x5c0   : > { %1336 = vmatmul.mubr.msk.bf16.vlgmr.msra.gmra.mrb[12].mxu0 %vm1102_vm12, %v1708_v35  ;;  %v739_v9 = vpack.c.bf16 %v1100_v8, %v1100_v8  ;;  %v789_v55 = vsub.f32 1.0, %v1100_v8 }
 0x5c2   : > { %1101 = vst [vmem:[%s1922_s1 + $0x14] sm:$0xf] %v739_v9  ;;  %v790_v56 = vmul.f32 %v789_v55, %v788_v54 }
 0x693   : > { %v776_v61 = vpop.f32.mrb[12].mxu0 }
 0x694   : > { %v787_v62 = vadd.f32 %v786_v60, %v776_v61  ;;  %v1337_v63 = vpop.f32.mrb[13].mxu0 }
 0x695   : > { %v779_v0 = vpop.f32.mrb[14].mxu0 }
 0x696   : > { %v791_v10 = vadd.f32 %v790_v56, %v787_v62  ;;  %v1338_v11 = vpop.f32.mrb[15].mxu0  ;;  %v840_v19 = vmul.f32 0.5, %v787_v62 }
 0x698   : > { %v792_v12 = vadd.f32 %v2001_v25, %v791_v10  ;;  %v844_v21 = vadd.f32 %v843_v20, %v840_v19 }
 0x69a   : > { %v1105_v13 = vadd.f32 -1.0, %v792_v12  ;;  %v846_v16 = vmul.f32 0.5, %v792_v12 }
 0x69c   : > { %vm794_vm13 = vcmp.gt.f32.partialorder %v1105_v13, 0.0 }
 0x69d   : > { %vm1108_vm14 = vmpackc.low %vm794_vm13, %vm794_vm13  ;;  %v1106_v14 = vsel %vm794_vm13, 1.0, %v1706_v2 }
 0x69e   : > { %1356 = vmatmul.mubr.msk.bf16.vlgmr.msra.gmra.mrb[12].mxu1 %vm1108_vm14, %v1708_v35  ;;  %v797_v15 = vpack.c.bf16 %v1106_v14, %v1106_v14  ;;  %v847_v17 = vsub.f32 1.0, %v1106_v14 }
 0x6a0   : > { %1107 = vst [vmem:[%s1922_s1 + $0x18] sm:$0xf] %v797_v15  ;;  %v848_v18 = vmul.f32 %v847_v17, %v846_v16 }
 0x771   : > { %v834_v22 = vpop.f32.mrb[12].mxu1 }
 0x772   : > { %v845_v23 = vadd.f32 %v844_v21, %v834_v22  ;;  %v1357_v24 = vpop.f32.mrb[13].mxu1 }
 0x773   : > { %v837_v26 = vpop.f32.mrb[14].mxu1 }
 0x774   : > { %v849_v27 = vadd.f32 %v848_v18, %v845_v23  ;;  %860 = vst [vmem:[#allocation11] sm:$0xff] %v845_v23  ;;  %v1358_v28 = vpop.f32.mrb[15].mxu1 }
 0x775   : > { %1540 = shalt.err (!%p1537_p1)
}
 0x776   : > { %s1541_s14 = scalar_lea.hbm %s2256_s6, 128 }
 0x777   : > { %p1542_p2 = scmp.ne.s32.totalorder %s2256_s6, %s1541_s14  ;;  %p1547_p13 = scmp.lt.u32.totalorder %s1541_s14, %s2256_s6 }
 0x779   : > { %p1543_p3 = pnand %p1542_p2, %p2281_p8 }
 0x77b   : > { %p1544_p7 = pneg %p1543_p3 }
 0x77d   : > { %p1549_p4 = pnand %p1547_p13, %p1544_p7 }
 0x77f   : > { %1552 = shalt.err (!%p1549_p4)
}
 0x780   : > { %1371 = dma.vmem_to_hbm [thread:$0]  (%p2281_p8), %s919_s28, 128, %s2256_s6, [#allocation12]   ;;  %v850_v35 = vadd.f32 %v2001_v25, %v849_v27 }
 0x781   : > { %s1710_s9 = smov [#allocation8]   ;;  %s1126_s16 = sshll.u32 %s1691_s24, 9 }
 0x782   : > { %s892_s18 = sshll.u32 %s1710_s9, 4  ;;  %859 = vst [vmem:[#allocation10] sm:$0xff] %v850_v35  ;;  %v1111_v29 = vadd.f32 -1.0, %v850_v35  ;;  %s1711_s27 = smov [#allocation10]   ;;  %s893_s18 = int_to_ptr.vmem [resolvable:$true] %s892_s18 }
 0x783   : > { %s905_s14 = sshll.u32 %s1711_s27, 4  ;;  %s876_s17 = sshll.u32 %s1922_s1, 4  ;;  %s2149_s14 = int_to_ptr.vmem [resolvable:$true] %s905_s14  ;;  %s2151_s17 = int_to_ptr.vmem [resolvable:$true] %s876_s17 }
 0x784   : > { %vm852_vm15 = vcmp.gt.f32.partialorder %v1111_v29, 0.0  ;;  %s2146_s19 = scalar_lea.hbm %s2253_s3, %s1126_s16  ;;  %s1553_s24 = scalar_lea.vmem %s893_s18, 128 }
 0x785   : > { %v1112_v30 = vsel %vm852_vm15, 1.0, %v1706_v2  ;;  %p1554_p6 = scmp.ne.s32.totalorder %s893_s18, %s1553_s24  ;;  %p1560_p0 = scmp.lt.s32.totalorder %s893_s18, %s893_s18 }
 0x786   : > { %v855_v25 = vpack.c.bf16 %v1112_v30, %v1112_v30  ;;  %858 = vst [vmem:[#allocation8] sm:$0xff] %v1112_v30  ;;  %p1561_p5 = scmp.lt.s32.totalorder %s1553_s24, %s1553_s24 }
 0x787   : > { %p1555_p12 = pnand %p1554_p6, %p2281_p8 }
 0x788   : > { %p1562_p9 = por %p1561_p5, %p1560_p0 }
 0x789   : > { %p1556_p11 = pneg %p1555_p12 }
 0x78b   : > { %p1563_p1 = pnand %p1562_p9, %p1556_p11 }
 0x78d   : > { %1566 = shalt.err (!%p1563_p1)
}
 0x78e   : > { %s1567_s7 = scalar_lea.hbm %s2254_s4, 128 }
 0x78f   : > { %p1568_p2 = scmp.ne.s32.totalorder %s2254_s4, %s1567_s7  ;;  %p1573_p13 = scmp.lt.u32.totalorder %s1567_s7, %s2254_s4 }
 0x791   : > { %p1569_p3 = pnand %p1568_p2, %p2281_p8 }
 0x793   : > { %p1570_p7 = pneg %p1569_p3 }
 0x795   : > { %p1575_p4 = pnand %p1573_p13, %p1570_p7 }
 0x797   : > { %1578 = shalt.err (!%p1575_p4)
}
 0x798   : > { %1367 = dma.vmem_to_hbm [thread:$0]  (%p2281_p8), %s893_s18, 128, %s2254_s4, [#allocation9]   ;;  %1113 = vst [vmem:[%s1922_s1 + $0x1c] sm:$0xf] %v855_v25 }
 0x799   : > { %s1579_s28 = scalar_lea.vmem %s2149_s14, 128  ;;  %p1586_p0 = scmp.lt.s32.totalorder %s2149_s14, %s2149_s14 }
 0x79a   : > { %p1580_p6 = scmp.ne.s32.totalorder %s2149_s14, %s1579_s28  ;;  %p1587_p5 = scmp.lt.s32.totalorder %s1579_s28, %s1579_s28 }
 0x79c   : > { %p1581_p12 = pnand %p1580_p6, %p2281_p8  ;;  %p1588_p9 = por %p1587_p5, %p1586_p0 }
 0x79e   : > { %p1582_p11 = pneg %p1581_p12 }
 0x7a0   : > { %p1589_p1 = pnand %p1588_p9, %p1582_p11 }
 0x7a2   : > { %1592 = shalt.err (!%p1589_p1)
}
 0x7a3   : > { %s1593_s9 = scalar_lea.hbm %s2255_s5, 128 }
 0x7a4   : > { %p1594_p2 = scmp.ne.s32.totalorder %s2255_s5, %s1593_s9  ;;  %p1599_p13 = scmp.lt.u32.totalorder %s1593_s9, %s2255_s5 }
 0x7a6   : > { %p1595_p3 = pnand %p1594_p2, %p2281_p8 }
 0x7a8   : > { %p1596_p7 = pneg %p1595_p3 }
 0x7aa   : > { %p1601_p4 = pnand %p1599_p13, %p1596_p7 }
 0x7ac   : > { %1604 = shalt.err (!%p1601_p4)
}
 0x7ad   : > { %1369 = dma.vmem_to_hbm [thread:$0]  (%p2281_p8), %s2149_s14, 128, %s2255_s5, [#allocation9]  }
 0x7ae   : > { %s862_s24 = scalar_lea.sflag [#allocation4], %s1908_s15  ;;  %s1605_s28 = scalar_lea.vmem %s2151_s17, 512 }
 0x7af   : > { %p1606_p6 = scmp.ne.s32.totalorder %s2151_s17, %s1605_s28  ;;  %s1712_s29 = smov [#allocation7]  }
 0x7b0   : > { %s1609_s7 = sshll.u32 %s1712_s29, 4  ;;  %s1610_s7 = int_to_ptr.vmem [resolvable:$false] %s1609_s7 }
 0x7b1   : > { %p1607_p12 = pnand %p1606_p6, %p1849_p10  ;;  %s1611_s9 = scalar_lea.vmem %s1610_s7, 1024 }
 0x7b2   : > { %p1612_p0 = scmp.lt.s32.totalorder %s2151_s17, %s1610_s7  ;;  %p1613_p5 = scmp.lt.s32.totalorder %s1611_s9, %s1605_s28 }
 0x7b3   : > { %p1608_p11 = pneg %p1607_p12 }
 0x7b4   : > { %p1614_p9 = por %p1613_p5, %p1612_p0 }
 0x7b6   : > { %p1615_p1 = pnand %p1614_p9, %p1608_p11 }
 0x7b8   : > { %1618 = shalt.err (!%p1615_p1)
}
 0x7b9   : > { %s1619_s14 = scalar_lea.hbm %s2146_s19, 512  ;;  %s1623_s1 = scalar_lea.hbm %s2253_s3, 1024 }
 0x7ba   : > { %p1620_p2 = scmp.ne.s32.totalorder %s2146_s19, %s1619_s14  ;;  %p1624_p13 = scmp.lt.u32.totalorder %s2146_s19, %s2253_s3 }
 0x7bb   : > { %p1625_p4 = scmp.lt.u32.totalorder %s1623_s1, %s1619_s14  ;;  %p1627_p12 = scmp.lt.u32.totalorder %s1619_s14, %s2146_s19 }
 0x7bc   : > { %p1621_p3 = pnand %p1620_p2, %p1849_p10 }
 0x7bd   : > { %p1626_p6 = por %p1625_p4, %p1624_p13 }
 0x7be   : > { %p1622_p7 = pneg %p1621_p3 }
 0x7bf   : > { %p1628_p11 = por %p1627_p12, %p1626_p6 }
 0x7c1   : > { %p1629_p0 = pnand %p1628_p11, %p1622_p7 }
 0x7c3   : > { %1632 = shalt.err (!%p1629_p0)
}
 0x7c4   : > { %s1713_s10 = smov 64   ;;  %s1714_s28 = smov 4  }
 0x7c5   : > { %1365 = dma.vmem_to_hbm [thread:$0]  (%p1849_p10), %s2151_s17, 512, %s2146_s19, %s862_s24, %s1713_s10, %s1713_s10, %s1714_s28  }
 0x7c6   : > { %1666 = dma.done.wait (%p2281_p8), [#allocation9], 256  }
 0x7c7   : > { %1668 = vsyncadd (%p2281_p8), [#allocation9], 4294967040 }
 0x7c8   : > { %1670 = dma.done.wait (%p2281_p8), [#allocation12], 128  }
 0x7c9   : > { %1672 = vsyncadd (%p2281_p8), [#allocation12], 4294967168 }
 0x7ca PF: > { %s942_s29 = sand.u32 1, %s1679_s21   ;;  %p2282_p5 = scmp.ne.s32.totalorder %s2268_s8, 0 }
 0x7cb   : > { %p2283_p9 = scmp.ge.s32.totalorder %s1699_s26, 2  ;;  %s943_s12 = scalar_lea.sflag [#allocation4], %s942_s29 }
 0x7cd   : > { %p1388_p1 = pnand %p2283_p9, %p2282_p5 }
 0x7cf   : > { %1674 = dma.done.wait (!%p1388_p1), %s943_s12, 512  }
 0x7d0   : > { %1676 = vsyncadd (!%p1388_p1), %s943_s12, 4294966784  ;;  %s26_s26 = sadd.s32 1, %s1699_s26   ;;  %s2284_s21 = smov %s1683_s22 }
 0x7d1   : > { %p23_p10 = scmp.ge.s32.totalorder %s26_s26, 4   ;;  %s2285_s22 = smov %s1687_s23 }
 0x7d2   : > { %s2286_s23 = smov %s1858_s20  ;;  %s2287_s24 = smov %s1695_s25 }
 0x7d3   : > { %s2288_s25 = smov %s2290_s13  ;;  %25 = sbr.rel (!%p23_p10) target bundleno = 11 (0xb), region = 126 }
 0x7da   :  { %948 = vsyncpa [#allocation3], 1 }
 0x7db   :  { %950 = vsyncpa [#allocation3 + $0x1], 1 }
 0x7dc   :  { %951 = vsyncpa [#allocation6], 1 }
 0x7dd   :  { %952 = vsyncpa [#allocation4], 1 }
 0x7de   :  { %954 = vsyncpa [#allocation4 + $0x1], 1 }
 0x7df   :  { %955 = vsyncpa [#allocation9], 1 }
 0x7e0   :  { %956 = vsyncpa [#allocation12], 1 }

</bundles_post_ra>
